<compile_context>
chip_gen: v6e
topology: v6e:2x2x1
jax: 0.10.0
libtpu: 0.0.40
codegen_flags: <defaults>
</compile_context>

<pallas_src>
import functools
import math

import jax
import jax.numpy as jnp
from jax.experimental import pallas as pl
from jax.experimental.pallas import tpu as pltpu


# ----------------------------- fused Pallas kernel ---------------------------

def _fused_forward_kernel(*refs, num_heads, num_enc, num_dec):
    """Full transformer forward for one batch element, entirely on-chip.

    refs layout:
      refs[0]   : src_emb block (1, S, E)
      refs[1]   : tgt_emb block (1, S, E)
      refs[2:-1]: packed per-layer weights (see pack_params for ordering)
      refs[-1]  : padded logits block (1, S, Vp)
    """
    src_ref, tgt_ref = refs[0], refs[1]
    out_ref = refs[-1]
    weights = refs[2:-1]
    cursor = [0]

    def nxt():
        r = weights[cursor[0]]
        cursor[0] += 1
        return r

    def layernorm(x, g_ref, b_ref):
        # LayerNorm over the embed (lane) axis, eps = 1e-5 (torch default).
        mean = jnp.mean(x, axis=-1, keepdims=True)
        cen = x - mean
        var = jnp.mean(cen * cen, axis=-1, keepdims=True)
        return cen * jax.lax.rsqrt(var + 1e-5) * g_ref[...] + b_ref[...]

    def mha(x_q, x_kv, w_qkv_ref, b_qkv_ref, w_oh_ref, b_o_ref):
        # x_q: [Sq, E], x_kv: [Sk, E] (same object for self-attention).
        E = x_q.shape[-1]
        nh = num_heads
        dh = E // nh

        # Fused Q|K|V projection: one wide [S, E] x [E, 3E] MXU matmul.
        qkv_q = jnp.dot(x_q, w_qkv_ref[...],
                        preferred_element_type=jnp.float32) + b_qkv_ref[...]
        if x_kv is x_q:                       # self-attention: project once
            qkv_kv = qkv_q
        else:                                 # cross-attention
            qkv_kv = jnp.dot(x_kv, w_qkv_ref[...],
                             preferred_element_type=jnp.float32) + b_qkv_ref[...]

        def heads(mat, base):                 # [S, 3E] -> [nh, S, dh]
            return jnp.stack(
                [mat[:, base + h * dh: base + (h + 1) * dh] for h in range(nh)],
                axis=0)

        Qh = heads(qkv_q, 0)
        Kh = heads(qkv_kv, E)
        Vh = heads(qkv_kv, 2 * E)

        # Batched (all heads at once) attention: two batched contractions.
        s = jnp.einsum("hqd,hkd->hqk", Qh, Kh,
                       preferred_element_type=jnp.float32) * (1.0 / math.sqrt(dh))
        s = s - jnp.max(s, axis=-1, keepdims=True)
        p = jnp.exp(s)
        p = p * pl.reciprocal(jnp.sum(p, axis=-1, keepdims=True), approx=True)
        ctx = jnp.einsum("hqk,hkd->hqd", p, Vh,
                         preferred_element_type=jnp.float32)

        # Output projection with the weight pre-blocked per head ([nh, dh, E]);
        # summing over heads merges them with no lane concatenate.
        oh = jnp.einsum("hqd,hde->hqe", ctx, w_oh_ref[...],
                        preferred_element_type=jnp.float32)
        out = oh[0]
        for h in range(1, nh):
            out = out + oh[h]
        return out + b_o_ref[...]

    def ffn(x, w1_ref, b1_ref, w2_ref, b2_ref):
        # TODO(synk): classical tanh MLP stands in for the photonic
        # QuantumFeedForward (CV circuit) — no Pallas equivalent exists.
        h = jnp.tanh(jnp.dot(x, w1_ref[...],
                             preferred_element_type=jnp.float32) + b1_ref[...])
        return jnp.dot(h, w2_ref[...],
                       preferred_element_type=jnp.float32) + b2_ref[...]

    # ----------------------------- encoder stack -----------------------------
    x = src_ref[0].astype(jnp.float32)
    for _ in range(num_enc):
        w_qkv, b_qkv, w_oh, b_o = nxt(), nxt(), nxt(), nxt()
        ln1_g, ln1_b = nxt(), nxt()
        w1, b1, w2, b2 = nxt(), nxt(), nxt(), nxt()
        ln2_g, ln2_b = nxt(), nxt()
        a = mha(x, x, w_qkv, b_qkv, w_oh, b_o)
        x = layernorm(a + x, ln1_g, ln1_b)
        f = ffn(x, w1, b1, w2, b2)
        x = layernorm(f + x, ln2_g, ln2_b)
    enc = x

    # ----------------------------- decoder stack -----------------------------
    y = tgt_ref[0].astype(jnp.float32)
    for _ in range(num_dec):
        sa_qkv, sa_bqkv, sa_woh, sa_bo = nxt(), nxt(), nxt(), nxt()
        ln1_g, ln1_b = nxt(), nxt()
        ca_qkv, ca_bqkv, ca_woh, ca_bo = nxt(), nxt(), nxt(), nxt()
        ln2_g, ln2_b = nxt(), nxt()
        w1, b1, w2, b2 = nxt(), nxt(), nxt(), nxt()
        ln3_g, ln3_b = nxt(), nxt()
        sa = mha(y, y, sa_qkv, sa_bqkv, sa_woh, sa_bo)
        y = layernorm(sa + y, ln1_g, ln1_b)
        ca = mha(y, enc, ca_qkv, ca_bqkv, ca_woh, ca_bo)
        y = layernorm(ca + y, ln2_g, ln2_b)
        f = ffn(y, w1, b1, w2, b2)
        y = layernorm(f + y, ln3_g, ln3_b)

    # ------------------ output projection (lane-dense store) -----------------
    out_w, out_b = nxt(), nxt()
    logits = jnp.dot(y, out_w[...],
                     preferred_element_type=jnp.float32) + out_b[...]
    out_ref[...] = logits[None].astype(out_ref.dtype)


# ------------------------------- JAX wrapper ---------------------------------

def input_embedding(embed_params, tokens):
    # token embedding + learned positional embedding; dropout is identity (eval).
    S = tokens.shape[1]
    tok = jnp.take(embed_params["tok_table"], tokens, axis=0)   # [B, S, E]
    pos = embed_params["pos_table"][None, :S]                   # [1, S, E]
    return tok + pos


def quantum_transformer_forward(embed_params, flat_weights, src, tgt, *,
                                num_heads, num_enc, num_dec,
                                vocab_size, vocab_padded):
    # Tiny XLA gather for the embeddings; everything after this is one fused
    # Pallas kernel call.
    src_emb = input_embedding(embed_params, src)
    tgt_emb = input_embedding(embed_params, tgt)
    B, S, E = src_emb.shape

    kern = functools.partial(_fused_forward_kernel, num_heads=num_heads,
                             num_enc=num_enc, num_dec=num_dec)
    act_spec = pl.BlockSpec((1, S, E), lambda b: (b, 0, 0))
    # Weights: full blocks with a constant index map — fetched once, kept
    # resident in VMEM across both grid steps.
    w_specs = [pl.BlockSpec(w.shape, lambda b, n=w.ndim: (0,) * n)
               for w in flat_weights]

    logits_padded = pl.pallas_call(
        kern,
        out_shape=jax.ShapeDtypeStruct((B, S, vocab_padded), jnp.float32),
        grid=(B,),
        in_specs=[act_spec, act_spec] + w_specs,
        out_specs=pl.BlockSpec((1, S, vocab_padded), lambda b: (b, 0, 0)),
        compiler_params=pltpu.CompilerParams(
            dimension_semantics=("parallel",),          # v7x: 1 batch elem / TC
            vmem_limit_bytes=32 * 1024 * 1024),
    )(src_emb, tgt_emb, *flat_weights)
    return logits_padded[..., :vocab_size]


# ------------------------------ parameter packing ----------------------------

def pack_params(params, num_heads):
    """Fuse/flatten the parameter tree into the flat list the kernel consumes.

    Per attention block (4 arrays): w_qkv [E,3E], b_qkv [1,3E],
      w_o_heads [nh,dh,E], b_o [1,E].
    Per encoder layer (12): attn(4), ln1(2), ff(4), ln2(2).
    Per decoder layer (18): self-attn(4), ln1(2), cross-attn(4), ln2(2),
      ff(4), ln3(2).
    Trailer: out_w zero-padded to [E, Vp], out_b to [1, Vp] (Vp = 128-multiple)
    so the final store is lane-dense.
    """
    E = params["embedding"]["tok_table"].shape[1]
    dh = E // num_heads

    def attn(p):
        w_qkv = jnp.concatenate([p["wq"], p["wk"], p["wv"]], axis=1)   # [E, 3E]
        b_qkv = jnp.concatenate([p["bq"], p["bk"], p["bv"]])[None]     # [1, 3E]
        w_oh = p["wo"].reshape(num_heads, dh, E)                       # [nh,dh,E]
        return [w_qkv, b_qkv, w_oh, p["bo"][None]]

    def ff(p):
        return [p["w1"], p["b1"][None], p["w2"], p["b2"][None]]

    flat = []
    for lp in params["encoder_layers"]:
        flat += attn(lp["attn"])
        flat += [lp["ln1_g"][None], lp["ln1_b"][None]]
        flat += ff(lp["ff"])
        flat += [lp["ln2_g"][None], lp["ln2_b"][None]]
    for lp in params["decoder_layers"]:
        flat += attn(lp["self_attn"])
        flat += [lp["ln1_g"][None], lp["ln1_b"][None]]
        flat += attn(lp["cross_attn"])
        flat += [lp["ln2_g"][None], lp["ln2_b"][None]]
        flat += ff(lp["ff"])
        flat += [lp["ln3_g"][None], lp["ln3_b"][None]]

    V = params["out_w"].shape[1]
    Vp = ((V + 127) // 128) * 128
    out_w = jnp.zeros((E, Vp), jnp.float32).at[:, :V].set(params["out_w"])
    out_b = jnp.zeros((1, Vp), jnp.float32).at[:, :V].set(params["out_b"][None])
    flat += [out_w, out_b]

    meta = dict(num_enc=len(params["encoder_layers"]),
                num_dec=len(params["decoder_layers"]),
                vocab_size=V, vocab_padded=Vp)
    return params["embedding"], flat, meta


# ------------------------------- parameter init ------------------------------

def _dense(key, fan_in, fan_out):
    kw, kb = jax.random.split(key)
    w = jax.random.normal(kw, (fan_in, fan_out), jnp.float32) * 0.02
    b = jax.random.normal(kb, (fan_out,), jnp.float32) * 0.02
    return w, b


def _attn_params(key, embed_len):
    ks = jax.random.split(key, 4)
    wq, bq = _dense(ks[0], embed_len, embed_len)
    wk, bk = _dense(ks[1], embed_len, embed_len)
    wv, bv = _dense(ks[2], embed_len, embed_len)
    wo, bo = _dense(ks[3], embed_len, embed_len)
    return dict(wq=wq, bq=bq, wk=wk, bk=bk, wv=wv, bv=bv, wo=wo, bo=bo)


def _ff_params(key, embed_len, hidden):
    k1, k2 = jax.random.split(key)
    w1, b1 = _dense(k1, embed_len, hidden)
    w2, b2 = _dense(k2, hidden, embed_len)
    return dict(w1=w1, b1=b1, w2=w2, b2=b2)


def init_params(key, *, vocab_size, embed_len, num_encoder_layers,
                num_decoder_layers, max_seq_len, ff_hidden):
    keys = iter(jax.random.split(key, 64))
    ones = lambda: jnp.ones((embed_len,), jnp.float32)
    zeros = lambda: jnp.zeros((embed_len,), jnp.float32)

    params = {
        "embedding": {
            "tok_table": jax.random.normal(next(keys), (vocab_size, embed_len),
                                           jnp.float32) * 0.02,
            "pos_table": jax.random.normal(next(keys), (max_seq_len, embed_len),
                                           jnp.float32) * 0.02,
        },
        "encoder_layers": [],
        "decoder_layers": [],
    }
    for _ in range(num_encoder_layers):
        params["encoder_layers"].append(dict(
            attn=_attn_params(next(keys), embed_len),
            ln1_g=ones(), ln1_b=zeros(), ln2_g=ones(), ln2_b=zeros(),
            ff=_ff_params(next(keys), embed_len, ff_hidden)))
    for _ in range(num_decoder_layers):
        params["decoder_layers"].append(dict(
            self_attn=_attn_params(next(keys), embed_len),
            cross_attn=_attn_params(next(keys), embed_len),
            ln1_g=ones(), ln1_b=zeros(), ln2_g=ones(), ln2_b=zeros(),
            ln3_g=ones(), ln3_b=zeros(),
            ff=_ff_params(next(keys), embed_len, ff_hidden)))
    ow, ob = _dense(next(keys), embed_len, vocab_size)
    params["out_w"] = ow
    params["out_b"] = ob
    return params


# ----------------------------------- main -------------------------------------

if __name__ == "__main__":
    # Module hyperparameters (small, consistent with the constructor signature).
    num_encoder_layers = 1
    num_decoder_layers = 1
    embed_len = 32
    num_heads = 4
    vocab_size = 16
    batch = 2
    seq = 8
    ff_hidden = embed_len  # quantum feed-forward keeps the embedding width

    key = jax.random.PRNGKey(0)
    kp, ks, kt = jax.random.split(key, 3)
    params = init_params(kp, vocab_size=vocab_size, embed_len=embed_len,
                         num_encoder_layers=num_encoder_layers,
                         num_decoder_layers=num_decoder_layers,
                         max_seq_len=seq, ff_hidden=ff_hidden)
    embed_params, flat_weights, meta = pack_params(params, num_heads)

    src = jax.random.randint(ks, (batch, seq), 0, vocab_size, dtype=jnp.int32)
    tgt = jax.random.randint(kt, (batch, seq), 0, vocab_size, dtype=jnp.int32)

    fwd = jax.jit(functools.partial(quantum_transformer_forward,
                                    num_heads=num_heads, **meta))
    logits = fwd(embed_params, flat_weights, src, tgt)
    jax.block_until_ready(logits)

    assert logits.shape == (batch, seq, vocab_size)
    assert bool(jnp.all(jnp.isfinite(logits)))
    print("KERNEL_OK")
</pallas_src>

<mosaic_0001>
module attributes {stable_mosaic.version = 11 : i64} {
  func.func @_fused_forward_kernel(%arg0: i32, %arg1: memref<1x8x32xf32, #tpu.memory_space<vmem>>, %arg2: memref<1x8x32xf32, #tpu.memory_space<vmem>>, %arg3: memref<32x96xf32, #tpu.memory_space<vmem>>, %arg4: memref<1x96xf32, #tpu.memory_space<vmem>>, %arg5: memref<4x8x32xf32, #tpu.memory_space<vmem>>, %arg6: memref<1x32xf32, #tpu.memory_space<vmem>>, %arg7: memref<1x32xf32, #tpu.memory_space<vmem>>, %arg8: memref<1x32xf32, #tpu.memory_space<vmem>>, %arg9: memref<32x32xf32, #tpu.memory_space<vmem>>, %arg10: memref<1x32xf32, #tpu.memory_space<vmem>>, %arg11: memref<32x32xf32, #tpu.memory_space<vmem>>, %arg12: memref<1x32xf32, #tpu.memory_space<vmem>>, %arg13: memref<1x32xf32, #tpu.memory_space<vmem>>, %arg14: memref<1x32xf32, #tpu.memory_space<vmem>>, %arg15: memref<32x96xf32, #tpu.memory_space<vmem>>, %arg16: memref<1x96xf32, #tpu.memory_space<vmem>>, %arg17: memref<4x8x32xf32, #tpu.memory_space<vmem>>, %arg18: memref<1x32xf32, #tpu.memory_space<vmem>>, %arg19: memref<1x32xf32, #tpu.memory_space<vmem>>, %arg20: memref<1x32xf32, #tpu.memory_space<vmem>>, %arg21: memref<32x96xf32, #tpu.memory_space<vmem>>, %arg22: memref<1x96xf32, #tpu.memory_space<vmem>>, %arg23: memref<4x8x32xf32, #tpu.memory_space<vmem>>, %arg24: memref<1x32xf32, #tpu.memory_space<vmem>>, %arg25: memref<1x32xf32, #tpu.memory_space<vmem>>, %arg26: memref<1x32xf32, #tpu.memory_space<vmem>>, %arg27: memref<32x32xf32, #tpu.memory_space<vmem>>, %arg28: memref<1x32xf32, #tpu.memory_space<vmem>>, %arg29: memref<32x32xf32, #tpu.memory_space<vmem>>, %arg30: memref<1x32xf32, #tpu.memory_space<vmem>>, %arg31: memref<1x32xf32, #tpu.memory_space<vmem>>, %arg32: memref<1x32xf32, #tpu.memory_space<vmem>>, %arg33: memref<32x128xf32, #tpu.memory_space<vmem>>, %arg34: memref<1x128xf32, #tpu.memory_space<vmem>>, %arg35: memref<1x8x128xf32, #tpu.memory_space<vmem>>) attributes {dimension_semantics = [#tpu.dimension_semantics<parallel>], iteration_bounds = array<i64: 2>, scalar_prefetch = 0 : i64, scratch_operands = 0 : i64, tpu.core_type = #tpu.core_type<tc>, window_params = [{transform_indices = @transform_0, window_bounds = array<i64: 1, 8, 32>}, {transform_indices = @transform_1, window_bounds = array<i64: 1, 8, 32>}, {pipeline_mode = #tpu.pipeline_mode<synchronous>, transform_indices = @transform_2, window_bounds = array<i64: 32, 96>}, {pipeline_mode = #tpu.pipeline_mode<synchronous>, transform_indices = @transform_3, window_bounds = array<i64: 1, 96>}, {pipeline_mode = #tpu.pipeline_mode<synchronous>, transform_indices = @transform_4, window_bounds = array<i64: 4, 8, 32>}, {pipeline_mode = #tpu.pipeline_mode<synchronous>, transform_indices = @transform_5, window_bounds = array<i64: 1, 32>}, {pipeline_mode = #tpu.pipeline_mode<synchronous>, transform_indices = @transform_6, window_bounds = array<i64: 1, 32>}, {pipeline_mode = #tpu.pipeline_mode<synchronous>, transform_indices = @transform_7, window_bounds = array<i64: 1, 32>}, {pipeline_mode = #tpu.pipeline_mode<synchronous>, transform_indices = @transform_8, window_bounds = array<i64: 32, 32>}, {pipeline_mode = #tpu.pipeline_mode<synchronous>, transform_indices = @transform_9, window_bounds = array<i64: 1, 32>}, {pipeline_mode = #tpu.pipeline_mode<synchronous>, transform_indices = @transform_10, window_bounds = array<i64: 32, 32>}, {pipeline_mode = #tpu.pipeline_mode<synchronous>, transform_indices = @transform_11, window_bounds = array<i64: 1, 32>}, {pipeline_mode = #tpu.pipeline_mode<synchronous>, transform_indices = @transform_12, window_bounds = array<i64: 1, 32>}, {pipeline_mode = #tpu.pipeline_mode<synchronous>, transform_indices = @transform_13, window_bounds = array<i64: 1, 32>}, {pipeline_mode = #tpu.pipeline_mode<synchronous>, transform_indices = @transform_14, window_bounds = array<i64: 32, 96>}, {pipeline_mode = #tpu.pipeline_mode<synchronous>, transform_indices = @transform_15, window_bounds = array<i64: 1, 96>}, {pipeline_mode = #tpu.pipeline_mode<synchronous>, transform_indices = @transform_16, window_bounds = array<i64: 4, 8, 32>}, {pipeline_mode = #tpu.pipeline_mode<synchronous>, transform_indices = @transform_17, window_bounds = array<i64: 1, 32>}, {pipeline_mode = #tpu.pipeline_mode<synchronous>, transform_indices = @transform_18, window_bounds = array<i64: 1, 32>}, {pipeline_mode = #tpu.pipeline_mode<synchronous>, transform_indices = @transform_19, window_bounds = array<i64: 1, 32>}, {pipeline_mode = #tpu.pipeline_mode<synchronous>, transform_indices = @transform_20, window_bounds = array<i64: 32, 96>}, {pipeline_mode = #tpu.pipeline_mode<synchronous>, transform_indices = @transform_21, window_bounds = array<i64: 1, 96>}, {pipeline_mode = #tpu.pipeline_mode<synchronous>, transform_indices = @transform_22, window_bounds = array<i64: 4, 8, 32>}, {pipeline_mode = #tpu.pipeline_mode<synchronous>, transform_indices = @transform_23, window_bounds = array<i64: 1, 32>}, {pipeline_mode = #tpu.pipeline_mode<synchronous>, transform_indices = @transform_24, window_bounds = array<i64: 1, 32>}, {pipeline_mode = #tpu.pipeline_mode<synchronous>, transform_indices = @transform_25, window_bounds = array<i64: 1, 32>}, {pipeline_mode = #tpu.pipeline_mode<synchronous>, transform_indices = @transform_26, window_bounds = array<i64: 32, 32>}, {pipeline_mode = #tpu.pipeline_mode<synchronous>, transform_indices = @transform_27, window_bounds = array<i64: 1, 32>}, {pipeline_mode = #tpu.pipeline_mode<synchronous>, transform_indices = @transform_28, window_bounds = array<i64: 32, 32>}, {pipeline_mode = #tpu.pipeline_mode<synchronous>, transform_indices = @transform_29, window_bounds = array<i64: 1, 32>}, {pipeline_mode = #tpu.pipeline_mode<synchronous>, transform_indices = @transform_30, window_bounds = array<i64: 1, 32>}, {pipeline_mode = #tpu.pipeline_mode<synchronous>, transform_indices = @transform_31, window_bounds = array<i64: 1, 32>}, {pipeline_mode = #tpu.pipeline_mode<synchronous>, transform_indices = @transform_32, window_bounds = array<i64: 32, 128>}, {pipeline_mode = #tpu.pipeline_mode<synchronous>, transform_indices = @transform_33, window_bounds = array<i64: 1, 128>}, {transform_indices = @transform_34, window_bounds = array<i64: 1, 8, 128>}]} {
    %c0 = arith.constant 0 : index
    %c0_0 = arith.constant 0 : index
    %c0_1 = arith.constant 0 : index
    %0 = vector.load %arg1[%c0, %c0_0, %c0_1] : memref<1x8x32xf32, #tpu.memory_space<vmem>>, vector<1x8x32xf32>
    %1 = vector.shape_cast %0 : vector<1x8x32xf32> to vector<8x32xf32>
    %c0_2 = arith.constant 0 : index
    %c0_3 = arith.constant 0 : index
    %2 = vector.load %arg3[%c0_2, %c0_3] : memref<32x96xf32, #tpu.memory_space<vmem>>, vector<32x96xf32>
    %cst = arith.constant dense<0.000000e+00> : vector<8x96xf32>
    %3 = tpu.matmul %1, %2, %cst {dimension_numbers = #tpu.dot_dimension_numbers<[1], [0], [0], [1], [0, 0, 1, 1], [], []>} : vector<8x32xf32>, vector<32x96xf32>, vector<8x96xf32> -> vector<8x96xf32>
    %c0_4 = arith.constant 0 : index
    %c0_5 = arith.constant 0 : index
    %4 = vector.load %arg4[%c0_4, %c0_5] : memref<1x96xf32, #tpu.memory_space<vmem>>, vector<1x96xf32>
    %5 = vector.broadcast %4 : vector<1x96xf32> to vector<8x96xf32>
    %6 = arith.addf %3, %5 : vector<8x96xf32>
    %7 = vector.extract_strided_slice %6 {offsets = [0, 0], sizes = [8, 8], strides = [1, 1]} : vector<8x96xf32> to vector<8x8xf32>
    %8 = vector.extract_strided_slice %6 {offsets = [0, 8], sizes = [8, 8], strides = [1, 1]} : vector<8x96xf32> to vector<8x8xf32>
    %9 = vector.extract_strided_slice %6 {offsets = [0, 16], sizes = [8, 8], strides = [1, 1]} : vector<8x96xf32> to vector<8x8xf32>
    %10 = vector.extract_strided_slice %6 {offsets = [0, 24], sizes = [8, 8], strides = [1, 1]} : vector<8x96xf32> to vector<8x8xf32>
    %11 = vector.shape_cast %7 : vector<8x8xf32> to vector<1x8x8xf32>
    %12 = vector.shape_cast %8 : vector<8x8xf32> to vector<1x8x8xf32>
    %13 = vector.shape_cast %9 : vector<8x8xf32> to vector<1x8x8xf32>
    %14 = vector.shape_cast %10 : vector<8x8xf32> to vector<1x8x8xf32>
    %15 = tpu.concatenate %11, %12, %13, %14 in 0 : vector<1x8x8xf32>, vector<1x8x8xf32>, vector<1x8x8xf32>, vector<1x8x8xf32> -> vector<4x8x8xf32>
    %16 = vector.extract_strided_slice %6 {offsets = [0, 32], sizes = [8, 8], strides = [1, 1]} : vector<8x96xf32> to vector<8x8xf32>
    %17 = vector.extract_strided_slice %6 {offsets = [0, 40], sizes = [8, 8], strides = [1, 1]} : vector<8x96xf32> to vector<8x8xf32>
    %18 = vector.extract_strided_slice %6 {offsets = [0, 48], sizes = [8, 8], strides = [1, 1]} : vector<8x96xf32> to vector<8x8xf32>
    %19 = vector.extract_strided_slice %6 {offsets = [0, 56], sizes = [8, 8], strides = [1, 1]} : vector<8x96xf32> to vector<8x8xf32>
    %20 = vector.shape_cast %16 : vector<8x8xf32> to vector<1x8x8xf32>
    %21 = vector.shape_cast %17 : vector<8x8xf32> to vector<1x8x8xf32>
    %22 = vector.shape_cast %18 : vector<8x8xf32> to vector<1x8x8xf32>
    %23 = vector.shape_cast %19 : vector<8x8xf32> to vector<1x8x8xf32>
    %24 = tpu.concatenate %20, %21, %22, %23 in 0 : vector<1x8x8xf32>, vector<1x8x8xf32>, vector<1x8x8xf32>, vector<1x8x8xf32> -> vector<4x8x8xf32>
    %25 = vector.extract_strided_slice %6 {offsets = [0, 64], sizes = [8, 8], strides = [1, 1]} : vector<8x96xf32> to vector<8x8xf32>
    %26 = vector.extract_strided_slice %6 {offsets = [0, 72], sizes = [8, 8], strides = [1, 1]} : vector<8x96xf32> to vector<8x8xf32>
    %27 = vector.extract_strided_slice %6 {offsets = [0, 80], sizes = [8, 8], strides = [1, 1]} : vector<8x96xf32> to vector<8x8xf32>
    %28 = vector.extract_strided_slice %6 {offsets = [0, 88], sizes = [8, 8], strides = [1, 1]} : vector<8x96xf32> to vector<8x8xf32>
    %29 = vector.shape_cast %25 : vector<8x8xf32> to vector<1x8x8xf32>
    %30 = vector.shape_cast %26 : vector<8x8xf32> to vector<1x8x8xf32>
    %31 = vector.shape_cast %27 : vector<8x8xf32> to vector<1x8x8xf32>
    %32 = vector.shape_cast %28 : vector<8x8xf32> to vector<1x8x8xf32>
    %33 = tpu.concatenate %29, %30, %31, %32 in 0 : vector<1x8x8xf32>, vector<1x8x8xf32>, vector<1x8x8xf32>, vector<1x8x8xf32> -> vector<4x8x8xf32>
    "tpu.trace_start"() <{level = 10 : i32, message = "hqd,hkd->hqk"}> : () -> ()
    %cst_6 = arith.constant dense<0.000000e+00> : vector<4x8x8xf32>
    %34 = tpu.matmul %15, %24, %cst_6 {dimension_numbers = #tpu.dot_dimension_numbers<[2], [2], [1], [1], [0, 0, 0, 1, 1, 1], [0], [0]>} : vector<4x8x8xf32>, vector<4x8x8xf32>, vector<4x8x8xf32> -> vector<4x8x8xf32>
    "tpu.trace_stop"() : () -> ()
    %cst_7 = arith.constant 0.353553385 : f32
    %35 = vector.broadcast %cst_7 : f32 to vector<4x8x8xf32>
    %36 = arith.mulf %34, %35 : vector<4x8x8xf32>
    %cst_8 = arith.constant dense<0xFF800000> : vector<4x8xf32>
    %37 = vector.multi_reduction <maximumf>, %36, %cst_8 [2] : vector<4x8x8xf32> to vector<4x8xf32>
    %38 = vector.shape_cast %37 : vector<4x8xf32> to vector<4x8x1xf32>
    %39 = vector.broadcast %38 : vector<4x8x1xf32> to vector<4x8x8xf32>
    %40 = arith.subf %36, %39 : vector<4x8x8xf32>
    %41 = math.exp %40 : vector<4x8x8xf32>
    %cst_9 = arith.constant dense<0.000000e+00> : vector<4x8xf32>
    %42 = vector.multi_reduction <add>, %41, %cst_9 [2] : vector<4x8x8xf32> to vector<4x8xf32>
    %43 = vector.shape_cast %42 : vector<4x8xf32> to vector<4x8x1xf32>
    %44 = tpu.reciprocal %43 {approx = true} : vector<4x8x1xf32> -> vector<4x8x1xf32>
    %45 = vector.broadcast %44 : vector<4x8x1xf32> to vector<4x8x8xf32>
    %46 = arith.mulf %41, %45 : vector<4x8x8xf32>
    "tpu.trace_start"() <{level = 10 : i32, message = "hqk,hkd->hqd"}> : () -> ()
    %cst_10 = arith.constant dense<0.000000e+00> : vector<4x8x8xf32>
    %47 = tpu.matmul %46, %33, %cst_10 {dimension_numbers = #tpu.dot_dimension_numbers<[2], [1], [1], [2], [0, 0, 0, 1, 1, 2], [0], [0]>} : vector<4x8x8xf32>, vector<4x8x8xf32>, vector<4x8x8xf32> -> vector<4x8x8xf32>
    "tpu.trace_stop"() : () -> ()
    %c0_11 = arith.constant 0 : index
    %c0_12 = arith.constant 0 : index
    %c0_13 = arith.constant 0 : index
    %48 = vector.load %arg5[%c0_11, %c0_12, %c0_13] : memref<4x8x32xf32, #tpu.memory_space<vmem>>, vector<4x8x32xf32>
    "tpu.trace_start"() <{level = 10 : i32, message = "hqd,hde->hqe"}> : () -> ()
    %cst_14 = arith.constant dense<0.000000e+00> : vector<4x8x32xf32>
    %49 = tpu.matmul %47, %48, %cst_14 {dimension_numbers = #tpu.dot_dimension_numbers<[2], [1], [1], [2], [0, 0, 0, 1, 1, 2], [0], [0]>} : vector<4x8x8xf32>, vector<4x8x32xf32>, vector<4x8x32xf32> -> vector<4x8x32xf32>
    "tpu.trace_stop"() : () -> ()
    %50 = vector.extract_strided_slice %49 {offsets = [0, 0, 0], sizes = [1, 8, 32], strides = [1, 1, 1]} : vector<4x8x32xf32> to vector<1x8x32xf32>
    %51 = vector.shape_cast %50 : vector<1x8x32xf32> to vector<8x32xf32>
    %52 = vector.extract_strided_slice %49 {offsets = [1, 0, 0], sizes = [1, 8, 32], strides = [1, 1, 1]} : vector<4x8x32xf32> to vector<1x8x32xf32>
    %53 = vector.shape_cast %52 : vector<1x8x32xf32> to vector<8x32xf32>
    %54 = arith.addf %51, %53 : vector<8x32xf32>
    %55 = vector.extract_strided_slice %49 {offsets = [2, 0, 0], sizes = [1, 8, 32], strides = [1, 1, 1]} : vector<4x8x32xf32> to vector<1x8x32xf32>
    %56 = vector.shape_cast %55 : vector<1x8x32xf32> to vector<8x32xf32>
    %57 = arith.addf %54, %56 : vector<8x32xf32>
    %58 = vector.extract_strided_slice %49 {offsets = [3, 0, 0], sizes = [1, 8, 32], strides = [1, 1, 1]} : vector<4x8x32xf32> to vector<1x8x32xf32>
    %59 = vector.shape_cast %58 : vector<1x8x32xf32> to vector<8x32xf32>
    %60 = arith.addf %57, %59 : vector<8x32xf32>
    %c0_15 = arith.constant 0 : index
    %c0_16 = arith.constant 0 : index
    %61 = vector.load %arg6[%c0_15, %c0_16] : memref<1x32xf32, #tpu.memory_space<vmem>>, vector<1x32xf32>
    %62 = vector.broadcast %61 : vector<1x32xf32> to vector<8x32xf32>
    %63 = arith.addf %60, %62 : vector<8x32xf32>
    %64 = arith.addf %63, %1 : vector<8x32xf32>
    %cst_17 = arith.constant dense<0.000000e+00> : vector<8xf32>
    %65 = vector.multi_reduction <add>, %64, %cst_17 [1] : vector<8x32xf32> to vector<8xf32>
    %66 = vector.shape_cast %65 : vector<8xf32> to vector<8x1xf32>
    %cst_18 = arith.constant 3.200000e+01 : f32
    %67 = vector.broadcast %cst_18 : f32 to vector<8x1xf32>
    %68 = arith.divf %66, %67 : vector<8x1xf32>
    %69 = vector.broadcast %68 : vector<8x1xf32> to vector<8x32xf32>
    %70 = arith.subf %64, %69 : vector<8x32xf32>
    %71 = arith.mulf %70, %70 : vector<8x32xf32>
    %cst_19 = arith.constant dense<0.000000e+00> : vector<8xf32>
    %72 = vector.multi_reduction <add>, %71, %cst_19 [1] : vector<8x32xf32> to vector<8xf32>
    %73 = vector.shape_cast %72 : vector<8xf32> to vector<8x1xf32>
    %cst_20 = arith.constant 3.200000e+01 : f32
    %74 = vector.broadcast %cst_20 : f32 to vector<8x1xf32>
    %75 = arith.divf %73, %74 : vector<8x1xf32>
    %cst_21 = arith.constant 9.99999974E-6 : f32
    %76 = vector.broadcast %cst_21 : f32 to vector<8x1xf32>
    %77 = arith.addf %75, %76 : vector<8x1xf32>
    %78 = math.rsqrt %77 : vector<8x1xf32>
    %79 = vector.broadcast %78 : vector<8x1xf32> to vector<8x32xf32>
    %80 = arith.mulf %70, %79 : vector<8x32xf32>
    %c0_22 = arith.constant 0 : index
    %c0_23 = arith.constant 0 : index
    %81 = vector.load %arg7[%c0_22, %c0_23] : memref<1x32xf32, #tpu.memory_space<vmem>>, vector<1x32xf32>
    %82 = vector.broadcast %81 : vector<1x32xf32> to vector<8x32xf32>
    %83 = arith.mulf %80, %82 : vector<8x32xf32>
    %c0_24 = arith.constant 0 : index
    %c0_25 = arith.constant 0 : index
    %84 = vector.load %arg8[%c0_24, %c0_25] : memref<1x32xf32, #tpu.memory_space<vmem>>, vector<1x32xf32>
    %85 = vector.broadcast %84 : vector<1x32xf32> to vector<8x32xf32>
    %86 = arith.addf %83, %85 : vector<8x32xf32>
    %c0_26 = arith.constant 0 : index
    %c0_27 = arith.constant 0 : index
    %87 = vector.load %arg9[%c0_26, %c0_27] : memref<32x32xf32, #tpu.memory_space<vmem>>, vector<32x32xf32>
    %cst_28 = arith.constant dense<0.000000e+00> : vector<8x32xf32>
    %88 = tpu.matmul %86, %87, %cst_28 {dimension_numbers = #tpu.dot_dimension_numbers<[1], [0], [0], [1], [0, 0, 1, 1], [], []>} : vector<8x32xf32>, vector<32x32xf32>, vector<8x32xf32> -> vector<8x32xf32>
    %c0_29 = arith.constant 0 : index
    %c0_30 = arith.constant 0 : index
    %89 = vector.load %arg10[%c0_29, %c0_30] : memref<1x32xf32, #tpu.memory_space<vmem>>, vector<1x32xf32>
    %90 = vector.broadcast %89 : vector<1x32xf32> to vector<8x32xf32>
    %91 = arith.addf %88, %90 : vector<8x32xf32>
    %92 = math.tanh %91 : vector<8x32xf32>
    %c0_31 = arith.constant 0 : index
    %c0_32 = arith.constant 0 : index
    %93 = vector.load %arg11[%c0_31, %c0_32] : memref<32x32xf32, #tpu.memory_space<vmem>>, vector<32x32xf32>
    %cst_33 = arith.constant dense<0.000000e+00> : vector<8x32xf32>
    %94 = tpu.matmul %92, %93, %cst_33 {dimension_numbers = #tpu.dot_dimension_numbers<[1], [0], [0], [1], [0, 0, 1, 1], [], []>} : vector<8x32xf32>, vector<32x32xf32>, vector<8x32xf32> -> vector<8x32xf32>
    %c0_34 = arith.constant 0 : index
    %c0_35 = arith.constant 0 : index
    %95 = vector.load %arg12[%c0_34, %c0_35] : memref<1x32xf32, #tpu.memory_space<vmem>>, vector<1x32xf32>
    %96 = vector.broadcast %95 : vector<1x32xf32> to vector<8x32xf32>
    %97 = arith.addf %94, %96 : vector<8x32xf32>
    %98 = arith.addf %97, %86 : vector<8x32xf32>
    %cst_36 = arith.constant dense<0.000000e+00> : vector<8xf32>
    %99 = vector.multi_reduction <add>, %98, %cst_36 [1] : vector<8x32xf32> to vector<8xf32>
    %100 = vector.shape_cast %99 : vector<8xf32> to vector<8x1xf32>
    %cst_37 = arith.constant 3.200000e+01 : f32
    %101 = vector.broadcast %cst_37 : f32 to vector<8x1xf32>
    %102 = arith.divf %100, %101 : vector<8x1xf32>
    %103 = vector.broadcast %102 : vector<8x1xf32> to vector<8x32xf32>
    %104 = arith.subf %98, %103 : vector<8x32xf32>
    %105 = arith.mulf %104, %104 : vector<8x32xf32>
    %cst_38 = arith.constant dense<0.000000e+00> : vector<8xf32>
    %106 = vector.multi_reduction <add>, %105, %cst_38 [1] : vector<8x32xf32> to vector<8xf32>
    %107 = vector.shape_cast %106 : vector<8xf32> to vector<8x1xf32>
    %cst_39 = arith.constant 3.200000e+01 : f32
    %108 = vector.broadcast %cst_39 : f32 to vector<8x1xf32>
    %109 = arith.divf %107, %108 : vector<8x1xf32>
    %cst_40 = arith.constant 9.99999974E-6 : f32
    %110 = vector.broadcast %cst_40 : f32 to vector<8x1xf32>
    %111 = arith.addf %109, %110 : vector<8x1xf32>
    %112 = math.rsqrt %111 : vector<8x1xf32>
    %113 = vector.broadcast %112 : vector<8x1xf32> to vector<8x32xf32>
    %114 = arith.mulf %104, %113 : vector<8x32xf32>
    %c0_41 = arith.constant 0 : index
    %c0_42 = arith.constant 0 : index
    %115 = vector.load %arg13[%c0_41, %c0_42] : memref<1x32xf32, #tpu.memory_space<vmem>>, vector<1x32xf32>
    %116 = vector.broadcast %115 : vector<1x32xf32> to vector<8x32xf32>
    %117 = arith.mulf %114, %116 : vector<8x32xf32>
    %c0_43 = arith.constant 0 : index
    %c0_44 = arith.constant 0 : index
    %118 = vector.load %arg14[%c0_43, %c0_44] : memref<1x32xf32, #tpu.memory_space<vmem>>, vector<1x32xf32>
    %119 = vector.broadcast %118 : vector<1x32xf32> to vector<8x32xf32>
    %120 = arith.addf %117, %119 : vector<8x32xf32>
    %c0_45 = arith.constant 0 : index
    %c0_46 = arith.constant 0 : index
    %c0_47 = arith.constant 0 : index
    %121 = vector.load %arg2[%c0_45, %c0_46, %c0_47] : memref<1x8x32xf32, #tpu.memory_space<vmem>>, vector<1x8x32xf32>
    %122 = vector.shape_cast %121 : vector<1x8x32xf32> to vector<8x32xf32>
    %c0_48 = arith.constant 0 : index
    %c0_49 = arith.constant 0 : index
    %123 = vector.load %arg15[%c0_48, %c0_49] : memref<32x96xf32, #tpu.memory_space<vmem>>, vector<32x96xf32>
    %cst_50 = arith.constant dense<0.000000e+00> : vector<8x96xf32>
    %124 = tpu.matmul %122, %123, %cst_50 {dimension_numbers = #tpu.dot_dimension_numbers<[1], [0], [0], [1], [0, 0, 1, 1], [], []>} : vector<8x32xf32>, vector<32x96xf32>, vector<8x96xf32> -> vector<8x96xf32>
    %c0_51 = arith.constant 0 : index
    %c0_52 = arith.constant 0 : index
    %125 = vector.load %arg16[%c0_51, %c0_52] : memref<1x96xf32, #tpu.memory_space<vmem>>, vector<1x96xf32>
    %126 = vector.broadcast %125 : vector<1x96xf32> to vector<8x96xf32>
    %127 = arith.addf %124, %126 : vector<8x96xf32>
    %128 = vector.extract_strided_slice %127 {offsets = [0, 0], sizes = [8, 8], strides = [1, 1]} : vector<8x96xf32> to vector<8x8xf32>
    %129 = vector.extract_strided_slice %127 {offsets = [0, 8], sizes = [8, 8], strides = [1, 1]} : vector<8x96xf32> to vector<8x8xf32>
    %130 = vector.extract_strided_slice %127 {offsets = [0, 16], sizes = [8, 8], strides = [1, 1]} : vector<8x96xf32> to vector<8x8xf32>
    %131 = vector.extract_strided_slice %127 {offsets = [0, 24], sizes = [8, 8], strides = [1, 1]} : vector<8x96xf32> to vector<8x8xf32>
    %132 = vector.shape_cast %128 : vector<8x8xf32> to vector<1x8x8xf32>
    %133 = vector.shape_cast %129 : vector<8x8xf32> to vector<1x8x8xf32>
    %134 = vector.shape_cast %130 : vector<8x8xf32> to vector<1x8x8xf32>
    %135 = vector.shape_cast %131 : vector<8x8xf32> to vector<1x8x8xf32>
    %136 = tpu.concatenate %132, %133, %134, %135 in 0 : vector<1x8x8xf32>, vector<1x8x8xf32>, vector<1x8x8xf32>, vector<1x8x8xf32> -> vector<4x8x8xf32>
    %137 = vector.extract_strided_slice %127 {offsets = [0, 32], sizes = [8, 8], strides = [1, 1]} : vector<8x96xf32> to vector<8x8xf32>
    %138 = vector.extract_strided_slice %127 {offsets = [0, 40], sizes = [8, 8], strides = [1, 1]} : vector<8x96xf32> to vector<8x8xf32>
    %139 = vector.extract_strided_slice %127 {offsets = [0, 48], sizes = [8, 8], strides = [1, 1]} : vector<8x96xf32> to vector<8x8xf32>
    %140 = vector.extract_strided_slice %127 {offsets = [0, 56], sizes = [8, 8], strides = [1, 1]} : vector<8x96xf32> to vector<8x8xf32>
    %141 = vector.shape_cast %137 : vector<8x8xf32> to vector<1x8x8xf32>
    %142 = vector.shape_cast %138 : vector<8x8xf32> to vector<1x8x8xf32>
    %143 = vector.shape_cast %139 : vector<8x8xf32> to vector<1x8x8xf32>
    %144 = vector.shape_cast %140 : vector<8x8xf32> to vector<1x8x8xf32>
    %145 = tpu.concatenate %141, %142, %143, %144 in 0 : vector<1x8x8xf32>, vector<1x8x8xf32>, vector<1x8x8xf32>, vector<1x8x8xf32> -> vector<4x8x8xf32>
    %146 = vector.extract_strided_slice %127 {offsets = [0, 64], sizes = [8, 8], strides = [1, 1]} : vector<8x96xf32> to vector<8x8xf32>
    %147 = vector.extract_strided_slice %127 {offsets = [0, 72], sizes = [8, 8], strides = [1, 1]} : vector<8x96xf32> to vector<8x8xf32>
    %148 = vector.extract_strided_slice %127 {offsets = [0, 80], sizes = [8, 8], strides = [1, 1]} : vector<8x96xf32> to vector<8x8xf32>
    %149 = vector.extract_strided_slice %127 {offsets = [0, 88], sizes = [8, 8], strides = [1, 1]} : vector<8x96xf32> to vector<8x8xf32>
    %150 = vector.shape_cast %146 : vector<8x8xf32> to vector<1x8x8xf32>
    %151 = vector.shape_cast %147 : vector<8x8xf32> to vector<1x8x8xf32>
    %152 = vector.shape_cast %148 : vector<8x8xf32> to vector<1x8x8xf32>
    %153 = vector.shape_cast %149 : vector<8x8xf32> to vector<1x8x8xf32>
    %154 = tpu.concatenate %150, %151, %152, %153 in 0 : vector<1x8x8xf32>, vector<1x8x8xf32>, vector<1x8x8xf32>, vector<1x8x8xf32> -> vector<4x8x8xf32>
    "tpu.trace_start"() <{level = 10 : i32, message = "hqd,hkd->hqk"}> : () -> ()
    %cst_53 = arith.constant dense<0.000000e+00> : vector<4x8x8xf32>
    %155 = tpu.matmul %136, %145, %cst_53 {dimension_numbers = #tpu.dot_dimension_numbers<[2], [2], [1], [1], [0, 0, 0, 1, 1, 1], [0], [0]>} : vector<4x8x8xf32>, vector<4x8x8xf32>, vector<4x8x8xf32> -> vector<4x8x8xf32>
    "tpu.trace_stop"() : () -> ()
    %cst_54 = arith.constant 0.353553385 : f32
    %156 = vector.broadcast %cst_54 : f32 to vector<4x8x8xf32>
    %157 = arith.mulf %155, %156 : vector<4x8x8xf32>
    %cst_55 = arith.constant dense<0xFF800000> : vector<4x8xf32>
    %158 = vector.multi_reduction <maximumf>, %157, %cst_55 [2] : vector<4x8x8xf32> to vector<4x8xf32>
    %159 = vector.shape_cast %158 : vector<4x8xf32> to vector<4x8x1xf32>
    %160 = vector.broadcast %159 : vector<4x8x1xf32> to vector<4x8x8xf32>
    %161 = arith.subf %157, %160 : vector<4x8x8xf32>
    %162 = math.exp %161 : vector<4x8x8xf32>
    %cst_56 = arith.constant dense<0.000000e+00> : vector<4x8xf32>
    %163 = vector.multi_reduction <add>, %162, %cst_56 [2] : vector<4x8x8xf32> to vector<4x8xf32>
    %164 = vector.shape_cast %163 : vector<4x8xf32> to vector<4x8x1xf32>
    %165 = tpu.reciprocal %164 {approx = true} : vector<4x8x1xf32> -> vector<4x8x1xf32>
    %166 = vector.broadcast %165 : vector<4x8x1xf32> to vector<4x8x8xf32>
    %167 = arith.mulf %162, %166 : vector<4x8x8xf32>
    "tpu.trace_start"() <{level = 10 : i32, message = "hqk,hkd->hqd"}> : () -> ()
    %cst_57 = arith.constant dense<0.000000e+00> : vector<4x8x8xf32>
    %168 = tpu.matmul %167, %154, %cst_57 {dimension_numbers = #tpu.dot_dimension_numbers<[2], [1], [1], [2], [0, 0, 0, 1, 1, 2], [0], [0]>} : vector<4x8x8xf32>, vector<4x8x8xf32>, vector<4x8x8xf32> -> vector<4x8x8xf32>
    "tpu.trace_stop"() : () -> ()
    %c0_58 = arith.constant 0 : index
    %c0_59 = arith.constant 0 : index
    %c0_60 = arith.constant 0 : index
    %169 = vector.load %arg17[%c0_58, %c0_59, %c0_60] : memref<4x8x32xf32, #tpu.memory_space<vmem>>, vector<4x8x32xf32>
    "tpu.trace_start"() <{level = 10 : i32, message = "hqd,hde->hqe"}> : () -> ()
    %cst_61 = arith.constant dense<0.000000e+00> : vector<4x8x32xf32>
    %170 = tpu.matmul %168, %169, %cst_61 {dimension_numbers = #tpu.dot_dimension_numbers<[2], [1], [1], [2], [0, 0, 0, 1, 1, 2], [0], [0]>} : vector<4x8x8xf32>, vector<4x8x32xf32>, vector<4x8x32xf32> -> vector<4x8x32xf32>
    "tpu.trace_stop"() : () -> ()
    %171 = vector.extract_strided_slice %170 {offsets = [0, 0, 0], sizes = [1, 8, 32], strides = [1, 1, 1]} : vector<4x8x32xf32> to vector<1x8x32xf32>
    %172 = vector.shape_cast %171 : vector<1x8x32xf32> to vector<8x32xf32>
    %173 = vector.extract_strided_slice %170 {offsets = [1, 0, 0], sizes = [1, 8, 32], strides = [1, 1, 1]} : vector<4x8x32xf32> to vector<1x8x32xf32>
    %174 = vector.shape_cast %173 : vector<1x8x32xf32> to vector<8x32xf32>
    %175 = arith.addf %172, %174 : vector<8x32xf32>
    %176 = vector.extract_strided_slice %170 {offsets = [2, 0, 0], sizes = [1, 8, 32], strides = [1, 1, 1]} : vector<4x8x32xf32> to vector<1x8x32xf32>
    %177 = vector.shape_cast %176 : vector<1x8x32xf32> to vector<8x32xf32>
    %178 = arith.addf %175, %177 : vector<8x32xf32>
    %179 = vector.extract_strided_slice %170 {offsets = [3, 0, 0], sizes = [1, 8, 32], strides = [1, 1, 1]} : vector<4x8x32xf32> to vector<1x8x32xf32>
    %180 = vector.shape_cast %179 : vector<1x8x32xf32> to vector<8x32xf32>
    %181 = arith.addf %178, %180 : vector<8x32xf32>
    %c0_62 = arith.constant 0 : index
    %c0_63 = arith.constant 0 : index
    %182 = vector.load %arg18[%c0_62, %c0_63] : memref<1x32xf32, #tpu.memory_space<vmem>>, vector<1x32xf32>
    %183 = vector.broadcast %182 : vector<1x32xf32> to vector<8x32xf32>
    %184 = arith.addf %181, %183 : vector<8x32xf32>
    %185 = arith.addf %184, %122 : vector<8x32xf32>
    %cst_64 = arith.constant dense<0.000000e+00> : vector<8xf32>
    %186 = vector.multi_reduction <add>, %185, %cst_64 [1] : vector<8x32xf32> to vector<8xf32>
    %187 = vector.shape_cast %186 : vector<8xf32> to vector<8x1xf32>
    %cst_65 = arith.constant 3.200000e+01 : f32
    %188 = vector.broadcast %cst_65 : f32 to vector<8x1xf32>
    %189 = arith.divf %187, %188 : vector<8x1xf32>
    %190 = vector.broadcast %189 : vector<8x1xf32> to vector<8x32xf32>
    %191 = arith.subf %185, %190 : vector<8x32xf32>
    %192 = arith.mulf %191, %191 : vector<8x32xf32>
    %cst_66 = arith.constant dense<0.000000e+00> : vector<8xf32>
    %193 = vector.multi_reduction <add>, %192, %cst_66 [1] : vector<8x32xf32> to vector<8xf32>
    %194 = vector.shape_cast %193 : vector<8xf32> to vector<8x1xf32>
    %cst_67 = arith.constant 3.200000e+01 : f32
    %195 = vector.broadcast %cst_67 : f32 to vector<8x1xf32>
    %196 = arith.divf %194, %195 : vector<8x1xf32>
    %cst_68 = arith.constant 9.99999974E-6 : f32
    %197 = vector.broadcast %cst_68 : f32 to vector<8x1xf32>
    %198 = arith.addf %196, %197 : vector<8x1xf32>
    %199 = math.rsqrt %198 : vector<8x1xf32>
    %200 = vector.broadcast %199 : vector<8x1xf32> to vector<8x32xf32>
    %201 = arith.mulf %191, %200 : vector<8x32xf32>
    %c0_69 = arith.constant 0 : index
    %c0_70 = arith.constant 0 : index
    %202 = vector.load %arg19[%c0_69, %c0_70] : memref<1x32xf32, #tpu.memory_space<vmem>>, vector<1x32xf32>
    %203 = vector.broadcast %202 : vector<1x32xf32> to vector<8x32xf32>
    %204 = arith.mulf %201, %203 : vector<8x32xf32>
    %c0_71 = arith.constant 0 : index
    %c0_72 = arith.constant 0 : index
    %205 = vector.load %arg20[%c0_71, %c0_72] : memref<1x32xf32, #tpu.memory_space<vmem>>, vector<1x32xf32>
    %206 = vector.broadcast %205 : vector<1x32xf32> to vector<8x32xf32>
    %207 = arith.addf %204, %206 : vector<8x32xf32>
    %c0_73 = arith.constant 0 : index
    %c0_74 = arith.constant 0 : index
    %208 = vector.load %arg21[%c0_73, %c0_74] : memref<32x96xf32, #tpu.memory_space<vmem>>, vector<32x96xf32>
    %cst_75 = arith.constant dense<0.000000e+00> : vector<8x96xf32>
    %209 = tpu.matmul %207, %208, %cst_75 {dimension_numbers = #tpu.dot_dimension_numbers<[1], [0], [0], [1], [0, 0, 1, 1], [], []>} : vector<8x32xf32>, vector<32x96xf32>, vector<8x96xf32> -> vector<8x96xf32>
    %c0_76 = arith.constant 0 : index
    %c0_77 = arith.constant 0 : index
    %210 = vector.load %arg22[%c0_76, %c0_77] : memref<1x96xf32, #tpu.memory_space<vmem>>, vector<1x96xf32>
    %211 = vector.broadcast %210 : vector<1x96xf32> to vector<8x96xf32>
    %212 = arith.addf %209, %211 : vector<8x96xf32>
    %c0_78 = arith.constant 0 : index
    %c0_79 = arith.constant 0 : index
    %213 = vector.load %arg21[%c0_78, %c0_79] : memref<32x96xf32, #tpu.memory_space<vmem>>, vector<32x96xf32>
    %cst_80 = arith.constant dense<0.000000e+00> : vector<8x96xf32>
    %214 = tpu.matmul %120, %213, %cst_80 {dimension_numbers = #tpu.dot_dimension_numbers<[1], [0], [0], [1], [0, 0, 1, 1], [], []>} : vector<8x32xf32>, vector<32x96xf32>, vector<8x96xf32> -> vector<8x96xf32>
    %c0_81 = arith.constant 0 : index
    %c0_82 = arith.constant 0 : index
    %215 = vector.load %arg22[%c0_81, %c0_82] : memref<1x96xf32, #tpu.memory_space<vmem>>, vector<1x96xf32>
    %216 = vector.broadcast %215 : vector<1x96xf32> to vector<8x96xf32>
    %217 = arith.addf %214, %216 : vector<8x96xf32>
    %218 = vector.extract_strided_slice %212 {offsets = [0, 0], sizes = [8, 8], strides = [1, 1]} : vector<8x96xf32> to vector<8x8xf32>
    %219 = vector.extract_strided_slice %212 {offsets = [0, 8], sizes = [8, 8], strides = [1, 1]} : vector<8x96xf32> to vector<8x8xf32>
    %220 = vector.extract_strided_slice %212 {offsets = [0, 16], sizes = [8, 8], strides = [1, 1]} : vector<8x96xf32> to vector<8x8xf32>
    %221 = vector.extract_strided_slice %212 {offsets = [0, 24], sizes = [8, 8], strides = [1, 1]} : vector<8x96xf32> to vector<8x8xf32>
    %222 = vector.shape_cast %218 : vector<8x8xf32> to vector<1x8x8xf32>
    %223 = vector.shape_cast %219 : vector<8x8xf32> to vector<1x8x8xf32>
    %224 = vector.shape_cast %220 : vector<8x8xf32> to vector<1x8x8xf32>
    %225 = vector.shape_cast %221 : vector<8x8xf32> to vector<1x8x8xf32>
    %226 = tpu.concatenate %222, %223, %224, %225 in 0 : vector<1x8x8xf32>, vector<1x8x8xf32>, vector<1x8x8xf32>, vector<1x8x8xf32> -> vector<4x8x8xf32>
    %227 = vector.extract_strided_slice %217 {offsets = [0, 32], sizes = [8, 8], strides = [1, 1]} : vector<8x96xf32> to vector<8x8xf32>
    %228 = vector.extract_strided_slice %217 {offsets = [0, 40], sizes = [8, 8], strides = [1, 1]} : vector<8x96xf32> to vector<8x8xf32>
    %229 = vector.extract_strided_slice %217 {offsets = [0, 48], sizes = [8, 8], strides = [1, 1]} : vector<8x96xf32> to vector<8x8xf32>
    %230 = vector.extract_strided_slice %217 {offsets = [0, 56], sizes = [8, 8], strides = [1, 1]} : vector<8x96xf32> to vector<8x8xf32>
    %231 = vector.shape_cast %227 : vector<8x8xf32> to vector<1x8x8xf32>
    %232 = vector.shape_cast %228 : vector<8x8xf32> to vector<1x8x8xf32>
    %233 = vector.shape_cast %229 : vector<8x8xf32> to vector<1x8x8xf32>
    %234 = vector.shape_cast %230 : vector<8x8xf32> to vector<1x8x8xf32>
    %235 = tpu.concatenate %231, %232, %233, %234 in 0 : vector<1x8x8xf32>, vector<1x8x8xf32>, vector<1x8x8xf32>, vector<1x8x8xf32> -> vector<4x8x8xf32>
    %236 = vector.extract_strided_slice %217 {offsets = [0, 64], sizes = [8, 8], strides = [1, 1]} : vector<8x96xf32> to vector<8x8xf32>
    %237 = vector.extract_strided_slice %217 {offsets = [0, 72], sizes = [8, 8], strides = [1, 1]} : vector<8x96xf32> to vector<8x8xf32>
    %238 = vector.extract_strided_slice %217 {offsets = [0, 80], sizes = [8, 8], strides = [1, 1]} : vector<8x96xf32> to vector<8x8xf32>
    %239 = vector.extract_strided_slice %217 {offsets = [0, 88], sizes = [8, 8], strides = [1, 1]} : vector<8x96xf32> to vector<8x8xf32>
    %240 = vector.shape_cast %236 : vector<8x8xf32> to vector<1x8x8xf32>
    %241 = vector.shape_cast %237 : vector<8x8xf32> to vector<1x8x8xf32>
    %242 = vector.shape_cast %238 : vector<8x8xf32> to vector<1x8x8xf32>
    %243 = vector.shape_cast %239 : vector<8x8xf32> to vector<1x8x8xf32>
    %244 = tpu.concatenate %240, %241, %242, %243 in 0 : vector<1x8x8xf32>, vector<1x8x8xf32>, vector<1x8x8xf32>, vector<1x8x8xf32> -> vector<4x8x8xf32>
    "tpu.trace_start"() <{level = 10 : i32, message = "hqd,hkd->hqk"}> : () -> ()
    %cst_83 = arith.constant dense<0.000000e+00> : vector<4x8x8xf32>
    %245 = tpu.matmul %226, %235, %cst_83 {dimension_numbers = #tpu.dot_dimension_numbers<[2], [2], [1], [1], [0, 0, 0, 1, 1, 1], [0], [0]>} : vector<4x8x8xf32>, vector<4x8x8xf32>, vector<4x8x8xf32> -> vector<4x8x8xf32>
    "tpu.trace_stop"() : () -> ()
    %cst_84 = arith.constant 0.353553385 : f32
    %246 = vector.broadcast %cst_84 : f32 to vector<4x8x8xf32>
    %247 = arith.mulf %245, %246 : vector<4x8x8xf32>
    %cst_85 = arith.constant dense<0xFF800000> : vector<4x8xf32>
    %248 = vector.multi_reduction <maximumf>, %247, %cst_85 [2] : vector<4x8x8xf32> to vector<4x8xf32>
    %249 = vector.shape_cast %248 : vector<4x8xf32> to vector<4x8x1xf32>
    %250 = vector.broadcast %249 : vector<4x8x1xf32> to vector<4x8x8xf32>
    %251 = arith.subf %247, %250 : vector<4x8x8xf32>
    %252 = math.exp %251 : vector<4x8x8xf32>
    %cst_86 = arith.constant dense<0.000000e+00> : vector<4x8xf32>
    %253 = vector.multi_reduction <add>, %252, %cst_86 [2] : vector<4x8x8xf32> to vector<4x8xf32>
    %254 = vector.shape_cast %253 : vector<4x8xf32> to vector<4x8x1xf32>
    %255 = tpu.reciprocal %254 {approx = true} : vector<4x8x1xf32> -> vector<4x8x1xf32>
    %256 = vector.broadcast %255 : vector<4x8x1xf32> to vector<4x8x8xf32>
    %257 = arith.mulf %252, %256 : vector<4x8x8xf32>
    "tpu.trace_start"() <{level = 10 : i32, message = "hqk,hkd->hqd"}> : () -> ()
    %cst_87 = arith.constant dense<0.000000e+00> : vector<4x8x8xf32>
    %258 = tpu.matmul %257, %244, %cst_87 {dimension_numbers = #tpu.dot_dimension_numbers<[2], [1], [1], [2], [0, 0, 0, 1, 1, 2], [0], [0]>} : vector<4x8x8xf32>, vector<4x8x8xf32>, vector<4x8x8xf32> -> vector<4x8x8xf32>
    "tpu.trace_stop"() : () -> ()
    %c0_88 = arith.constant 0 : index
    %c0_89 = arith.constant 0 : index
    %c0_90 = arith.constant 0 : index
    %259 = vector.load %arg23[%c0_88, %c0_89, %c0_90] : memref<4x8x32xf32, #tpu.memory_space<vmem>>, vector<4x8x32xf32>
    "tpu.trace_start"() <{level = 10 : i32, message = "hqd,hde->hqe"}> : () -> ()
    %cst_91 = arith.constant dense<0.000000e+00> : vector<4x8x32xf32>
    %260 = tpu.matmul %258, %259, %cst_91 {dimension_numbers = #tpu.dot_dimension_numbers<[2], [1], [1], [2], [0, 0, 0, 1, 1, 2], [0], [0]>} : vector<4x8x8xf32>, vector<4x8x32xf32>, vector<4x8x32xf32> -> vector<4x8x32xf32>
    "tpu.trace_stop"() : () -> ()
    %261 = vector.extract_strided_slice %260 {offsets = [0, 0, 0], sizes = [1, 8, 32], strides = [1, 1, 1]} : vector<4x8x32xf32> to vector<1x8x32xf32>
    %262 = vector.shape_cast %261 : vector<1x8x32xf32> to vector<8x32xf32>
    %263 = vector.extract_strided_slice %260 {offsets = [1, 0, 0], sizes = [1, 8, 32], strides = [1, 1, 1]} : vector<4x8x32xf32> to vector<1x8x32xf32>
    %264 = vector.shape_cast %263 : vector<1x8x32xf32> to vector<8x32xf32>
    %265 = arith.addf %262, %264 : vector<8x32xf32>
    %266 = vector.extract_strided_slice %260 {offsets = [2, 0, 0], sizes = [1, 8, 32], strides = [1, 1, 1]} : vector<4x8x32xf32> to vector<1x8x32xf32>
    %267 = vector.shape_cast %266 : vector<1x8x32xf32> to vector<8x32xf32>
    %268 = arith.addf %265, %267 : vector<8x32xf32>
    %269 = vector.extract_strided_slice %260 {offsets = [3, 0, 0], sizes = [1, 8, 32], strides = [1, 1, 1]} : vector<4x8x32xf32> to vector<1x8x32xf32>
    %270 = vector.shape_cast %269 : vector<1x8x32xf32> to vector<8x32xf32>
    %271 = arith.addf %268, %270 : vector<8x32xf32>
    %c0_92 = arith.constant 0 : index
    %c0_93 = arith.constant 0 : index
    %272 = vector.load %arg24[%c0_92, %c0_93] : memref<1x32xf32, #tpu.memory_space<vmem>>, vector<1x32xf32>
    %273 = vector.broadcast %272 : vector<1x32xf32> to vector<8x32xf32>
    %274 = arith.addf %271, %273 : vector<8x32xf32>
    %275 = arith.addf %274, %207 : vector<8x32xf32>
    %cst_94 = arith.constant dense<0.000000e+00> : vector<8xf32>
    %276 = vector.multi_reduction <add>, %275, %cst_94 [1] : vector<8x32xf32> to vector<8xf32>
    %277 = vector.shape_cast %276 : vector<8xf32> to vector<8x1xf32>
    %cst_95 = arith.constant 3.200000e+01 : f32
    %278 = vector.broadcast %cst_95 : f32 to vector<8x1xf32>
    %279 = arith.divf %277, %278 : vector<8x1xf32>
    %280 = vector.broadcast %279 : vector<8x1xf32> to vector<8x32xf32>
    %281 = arith.subf %275, %280 : vector<8x32xf32>
    %282 = arith.mulf %281, %281 : vector<8x32xf32>
    %cst_96 = arith.constant dense<0.000000e+00> : vector<8xf32>
    %283 = vector.multi_reduction <add>, %282, %cst_96 [1] : vector<8x32xf32> to vector<8xf32>
    %284 = vector.shape_cast %283 : vector<8xf32> to vector<8x1xf32>
    %cst_97 = arith.constant 3.200000e+01 : f32
    %285 = vector.broadcast %cst_97 : f32 to vector<8x1xf32>
    %286 = arith.divf %284, %285 : vector<8x1xf32>
    %cst_98 = arith.constant 9.99999974E-6 : f32
    %287 = vector.broadcast %cst_98 : f32 to vector<8x1xf32>
    %288 = arith.addf %286, %287 : vector<8x1xf32>
    %289 = math.rsqrt %288 : vector<8x1xf32>
    %290 = vector.broadcast %289 : vector<8x1xf32> to vector<8x32xf32>
    %291 = arith.mulf %281, %290 : vector<8x32xf32>
    %c0_99 = arith.constant 0 : index
    %c0_100 = arith.constant 0 : index
    %292 = vector.load %arg25[%c0_99, %c0_100] : memref<1x32xf32, #tpu.memory_space<vmem>>, vector<1x32xf32>
    %293 = vector.broadcast %292 : vector<1x32xf32> to vector<8x32xf32>
    %294 = arith.mulf %291, %293 : vector<8x32xf32>
    %c0_101 = arith.constant 0 : index
    %c0_102 = arith.constant 0 : index
    %295 = vector.load %arg26[%c0_101, %c0_102] : memref<1x32xf32, #tpu.memory_space<vmem>>, vector<1x32xf32>
    %296 = vector.broadcast %295 : vector<1x32xf32> to vector<8x32xf32>
    %297 = arith.addf %294, %296 : vector<8x32xf32>
    %c0_103 = arith.constant 0 : index
    %c0_104 = arith.constant 0 : index
    %298 = vector.load %arg27[%c0_103, %c0_104] : memref<32x32xf32, #tpu.memory_space<vmem>>, vector<32x32xf32>
    %cst_105 = arith.constant dense<0.000000e+00> : vector<8x32xf32>
    %299 = tpu.matmul %297, %298, %cst_105 {dimension_numbers = #tpu.dot_dimension_numbers<[1], [0], [0], [1], [0, 0, 1, 1], [], []>} : vector<8x32xf32>, vector<32x32xf32>, vector<8x32xf32> -> vector<8x32xf32>
    %c0_106 = arith.constant 0 : index
    %c0_107 = arith.constant 0 : index
    %300 = vector.load %arg28[%c0_106, %c0_107] : memref<1x32xf32, #tpu.memory_space<vmem>>, vector<1x32xf32>
    %301 = vector.broadcast %300 : vector<1x32xf32> to vector<8x32xf32>
    %302 = arith.addf %299, %301 : vector<8x32xf32>
    %303 = math.tanh %302 : vector<8x32xf32>
    %c0_108 = arith.constant 0 : index
    %c0_109 = arith.constant 0 : index
    %304 = vector.load %arg29[%c0_108, %c0_109] : memref<32x32xf32, #tpu.memory_space<vmem>>, vector<32x32xf32>
    %cst_110 = arith.constant dense<0.000000e+00> : vector<8x32xf32>
    %305 = tpu.matmul %303, %304, %cst_110 {dimension_numbers = #tpu.dot_dimension_numbers<[1], [0], [0], [1], [0, 0, 1, 1], [], []>} : vector<8x32xf32>, vector<32x32xf32>, vector<8x32xf32> -> vector<8x32xf32>
    %c0_111 = arith.constant 0 : index
    %c0_112 = arith.constant 0 : index
    %306 = vector.load %arg30[%c0_111, %c0_112] : memref<1x32xf32, #tpu.memory_space<vmem>>, vector<1x32xf32>
    %307 = vector.broadcast %306 : vector<1x32xf32> to vector<8x32xf32>
    %308 = arith.addf %305, %307 : vector<8x32xf32>
    %309 = arith.addf %308, %297 : vector<8x32xf32>
    %cst_113 = arith.constant dense<0.000000e+00> : vector<8xf32>
    %310 = vector.multi_reduction <add>, %309, %cst_113 [1] : vector<8x32xf32> to vector<8xf32>
    %311 = vector.shape_cast %310 : vector<8xf32> to vector<8x1xf32>
    %cst_114 = arith.constant 3.200000e+01 : f32
    %312 = vector.broadcast %cst_114 : f32 to vector<8x1xf32>
    %313 = arith.divf %311, %312 : vector<8x1xf32>
    %314 = vector.broadcast %313 : vector<8x1xf32> to vector<8x32xf32>
    %315 = arith.subf %309, %314 : vector<8x32xf32>
    %316 = arith.mulf %315, %315 : vector<8x32xf32>
    %cst_115 = arith.constant dense<0.000000e+00> : vector<8xf32>
    %317 = vector.multi_reduction <add>, %316, %cst_115 [1] : vector<8x32xf32> to vector<8xf32>
    %318 = vector.shape_cast %317 : vector<8xf32> to vector<8x1xf32>
    %cst_116 = arith.constant 3.200000e+01 : f32
    %319 = vector.broadcast %cst_116 : f32 to vector<8x1xf32>
    %320 = arith.divf %318, %319 : vector<8x1xf32>
    %cst_117 = arith.constant 9.99999974E-6 : f32
    %321 = vector.broadcast %cst_117 : f32 to vector<8x1xf32>
    %322 = arith.addf %320, %321 : vector<8x1xf32>
    %323 = math.rsqrt %322 : vector<8x1xf32>
    %324 = vector.broadcast %323 : vector<8x1xf32> to vector<8x32xf32>
    %325 = arith.mulf %315, %324 : vector<8x32xf32>
    %c0_118 = arith.constant 0 : index
    %c0_119 = arith.constant 0 : index
    %326 = vector.load %arg31[%c0_118, %c0_119] : memref<1x32xf32, #tpu.memory_space<vmem>>, vector<1x32xf32>
    %327 = vector.broadcast %326 : vector<1x32xf32> to vector<8x32xf32>
    %328 = arith.mulf %325, %327 : vector<8x32xf32>
    %c0_120 = arith.constant 0 : index
    %c0_121 = arith.constant 0 : index
    %329 = vector.load %arg32[%c0_120, %c0_121] : memref<1x32xf32, #tpu.memory_space<vmem>>, vector<1x32xf32>
    %330 = vector.broadcast %329 : vector<1x32xf32> to vector<8x32xf32>
    %331 = arith.addf %328, %330 : vector<8x32xf32>
    %c0_122 = arith.constant 0 : index
    %c0_123 = arith.constant 0 : index
    %332 = vector.load %arg33[%c0_122, %c0_123] : memref<32x128xf32, #tpu.memory_space<vmem>>, vector<32x128xf32>
    %cst_124 = arith.constant dense<0.000000e+00> : vector<8x128xf32>
    %333 = tpu.matmul %331, %332, %cst_124 {dimension_numbers = #tpu.dot_dimension_numbers<[1], [0], [0], [1], [0, 0, 1, 1], [], []>} : vector<8x32xf32>, vector<32x128xf32>, vector<8x128xf32> -> vector<8x128xf32>
    %c0_125 = arith.constant 0 : index
    %c0_126 = arith.constant 0 : index
    %334 = vector.load %arg34[%c0_125, %c0_126] : memref<1x128xf32, #tpu.memory_space<vmem>>, vector<1x128xf32>
    %335 = vector.broadcast %334 : vector<1x128xf32> to vector<8x128xf32>
    %336 = arith.addf %333, %335 : vector<8x128xf32>
    %337 = vector.shape_cast %336 : vector<8x128xf32> to vector<1x8x128xf32>
    %c0_127 = arith.constant 0 : index
    %c0_128 = arith.constant 0 : index
    %c0_129 = arith.constant 0 : index
    %338 = vector.load %arg35[%c0_127, %c0_128, %c0_129] : memref<1x8x128xf32, #tpu.memory_space<vmem>>, vector<1x8x128xf32>
    tpu.vector_store %arg35[%c0_127, %c0_128, %c0_129], %337 {strides = array<i32>} : memref<1x8x128xf32, #tpu.memory_space<vmem>>, vector<1x8x128xf32>,
    return
  }
  func.func @transform_0(%arg0: i32) -> (i32, i32, i32) {
    %c0_i32 = arith.constant 0 : i32
    %c0_i32_0 = arith.constant 0 : i32
    %c0_i32_1 = arith.constant 0 : i32
    return %arg0, %c0_i32, %c0_i32_0 : i32, i32, i32
  }
  func.func @transform_1(%arg0: i32) -> (i32, i32, i32) {
    %c0_i32 = arith.constant 0 : i32
    %c0_i32_0 = arith.constant 0 : i32
    %c0_i32_1 = arith.constant 0 : i32
    return %arg0, %c0_i32, %c0_i32_0 : i32, i32, i32
  }
  func.func @transform_2(%arg0: i32) -> (i32, i32) {
    %c0_i32 = arith.constant 0 : i32
    %c0_i32_0 = arith.constant 0 : i32
    %c0_i32_1 = arith.constant 0 : i32
    return %c0_i32, %c0_i32_0 : i32, i32
  }
  func.func @transform_3(%arg0: i32) -> (i32, i32) {
    %c0_i32 = arith.constant 0 : i32
    %c0_i32_0 = arith.constant 0 : i32
    %c0_i32_1 = arith.constant 0 : i32
    return %c0_i32, %c0_i32_0 : i32, i32
  }
  func.func @transform_4(%arg0: i32) -> (i32, i32, i32) {
    %c0_i32 = arith.constant 0 : i32
    %c0_i32_0 = arith.constant 0 : i32
    %c0_i32_1 = arith.constant 0 : i32
    %c0_i32_2 = arith.constant 0 : i32
    return %c0_i32, %c0_i32_0, %c0_i32_1 : i32, i32, i32
  }
  func.func @transform_5(%arg0: i32) -> (i32, i32) {
    %c0_i32 = arith.constant 0 : i32
    %c0_i32_0 = arith.constant 0 : i32
    %c0_i32_1 = arith.constant 0 : i32
    return %c0_i32, %c0_i32_0 : i32, i32
  }
  func.func @transform_6(%arg0: i32) -> (i32, i32) {
    %c0_i32 = arith.constant 0 : i32
    %c0_i32_0 = arith.constant 0 : i32
    %c0_i32_1 = arith.constant 0 : i32
    return %c0_i32, %c0_i32_0 : i32, i32
  }
  func.func @transform_7(%arg0: i32) -> (i32, i32) {
    %c0_i32 = arith.constant 0 : i32
    %c0_i32_0 = arith.constant 0 : i32
    %c0_i32_1 = arith.constant 0 : i32
    return %c0_i32, %c0_i32_0 : i32, i32
  }
  func.func @transform_8(%arg0: i32) -> (i32, i32) {
    %c0_i32 = arith.constant 0 : i32
    %c0_i32_0 = arith.constant 0 : i32
    %c0_i32_1 = arith.constant 0 : i32
    return %c0_i32, %c0_i32_0 : i32, i32
  }
  func.func @transform_9(%arg0: i32) -> (i32, i32) {
    %c0_i32 = arith.constant 0 : i32
    %c0_i32_0 = arith.constant 0 : i32
    %c0_i32_1 = arith.constant 0 : i32
    return %c0_i32, %c0_i32_0 : i32, i32
  }
  func.func @transform_10(%arg0: i32) -> (i32, i32) {
    %c0_i32 = arith.constant 0 : i32
    %c0_i32_0 = arith.constant 0 : i32
    %c0_i32_1 = arith.constant 0 : i32
    return %c0_i32, %c0_i32_0 : i32, i32
  }
  func.func @transform_11(%arg0: i32) -> (i32, i32) {
    %c0_i32 = arith.constant 0 : i32
    %c0_i32_0 = arith.constant 0 : i32
    %c0_i32_1 = arith.constant 0 : i32
    return %c0_i32, %c0_i32_0 : i32, i32
  }
  func.func @transform_12(%arg0: i32) -> (i32, i32) {
    %c0_i32 = arith.constant 0 : i32
    %c0_i32_0 = arith.constant 0 : i32
    %c0_i32_1 = arith.constant 0 : i32
    return %c0_i32, %c0_i32_0 : i32, i32
  }
  func.func @transform_13(%arg0: i32) -> (i32, i32) {
    %c0_i32 = arith.constant 0 : i32
    %c0_i32_0 = arith.constant 0 : i32
    %c0_i32_1 = arith.constant 0 : i32
    return %c0_i32, %c0_i32_0 : i32, i32
  }
  func.func @transform_14(%arg0: i32) -> (i32, i32) {
    %c0_i32 = arith.constant 0 : i32
    %c0_i32_0 = arith.constant 0 : i32
    %c0_i32_1 = arith.constant 0 : i32
    return %c0_i32, %c0_i32_0 : i32, i32
  }
  func.func @transform_15(%arg0: i32) -> (i32, i32) {
    %c0_i32 = arith.constant 0 : i32
    %c0_i32_0 = arith.constant 0 : i32
    %c0_i32_1 = arith.constant 0 : i32
    return %c0_i32, %c0_i32_0 : i32, i32
  }
  func.func @transform_16(%arg0: i32) -> (i32, i32, i32) {
    %c0_i32 = arith.constant 0 : i32
    %c0_i32_0 = arith.constant 0 : i32
    %c0_i32_1 = arith.constant 0 : i32
    %c0_i32_2 = arith.constant 0 : i32
    return %c0_i32, %c0_i32_0, %c0_i32_1 : i32, i32, i32
  }
  func.func @transform_17(%arg0: i32) -> (i32, i32) {
    %c0_i32 = arith.constant 0 : i32
    %c0_i32_0 = arith.constant 0 : i32
    %c0_i32_1 = arith.constant 0 : i32
    return %c0_i32, %c0_i32_0 : i32, i32
  }
  func.func @transform_18(%arg0: i32) -> (i32, i32) {
    %c0_i32 = arith.constant 0 : i32
    %c0_i32_0 = arith.constant 0 : i32
    %c0_i32_1 = arith.constant 0 : i32
    return %c0_i32, %c0_i32_0 : i32, i32
  }
  func.func @transform_19(%arg0: i32) -> (i32, i32) {
    %c0_i32 = arith.constant 0 : i32
    %c0_i32_0 = arith.constant 0 : i32
    %c0_i32_1 = arith.constant 0 : i32
    return %c0_i32, %c0_i32_0 : i32, i32
  }
  func.func @transform_20(%arg0: i32) -> (i32, i32) {
    %c0_i32 = arith.constant 0 : i32
    %c0_i32_0 = arith.constant 0 : i32
    %c0_i32_1 = arith.constant 0 : i32
    return %c0_i32, %c0_i32_0 : i32, i32
  }
  func.func @transform_21(%arg0: i32) -> (i32, i32) {
    %c0_i32 = arith.constant 0 : i32
    %c0_i32_0 = arith.constant 0 : i32
    %c0_i32_1 = arith.constant 0 : i32
    return %c0_i32, %c0_i32_0 : i32, i32
  }
  func.func @transform_22(%arg0: i32) -> (i32, i32, i32) {
    %c0_i32 = arith.constant 0 : i32
    %c0_i32_0 = arith.constant 0 : i32
    %c0_i32_1 = arith.constant 0 : i32
    %c0_i32_2 = arith.constant 0 : i32
    return %c0_i32, %c0_i32_0, %c0_i32_1 : i32, i32, i32
  }
  func.func @transform_23(%arg0: i32) -> (i32, i32) {
    %c0_i32 = arith.constant 0 : i32
    %c0_i32_0 = arith.constant 0 : i32
    %c0_i32_1 = arith.constant 0 : i32
    return %c0_i32, %c0_i32_0 : i32, i32
  }
  func.func @transform_24(%arg0: i32) -> (i32, i32) {
    %c0_i32 = arith.constant 0 : i32
    %c0_i32_0 = arith.constant 0 : i32
    %c0_i32_1 = arith.constant 0 : i32
    return %c0_i32, %c0_i32_0 : i32, i32
  }
  func.func @transform_25(%arg0: i32) -> (i32, i32) {
    %c0_i32 = arith.constant 0 : i32
    %c0_i32_0 = arith.constant 0 : i32
    %c0_i32_1 = arith.constant 0 : i32
    return %c0_i32, %c0_i32_0 : i32, i32
  }
  func.func @transform_26(%arg0: i32) -> (i32, i32) {
    %c0_i32 = arith.constant 0 : i32
    %c0_i32_0 = arith.constant 0 : i32
    %c0_i32_1 = arith.constant 0 : i32
    return %c0_i32, %c0_i32_0 : i32, i32
  }
  func.func @transform_27(%arg0: i32) -> (i32, i32) {
    %c0_i32 = arith.constant 0 : i32
    %c0_i32_0 = arith.constant 0 : i32
    %c0_i32_1 = arith.constant 0 : i32
    return %c0_i32, %c0_i32_0 : i32, i32
  }
  func.func @transform_28(%arg0: i32) -> (i32, i32) {
    %c0_i32 = arith.constant 0 : i32
    %c0_i32_0 = arith.constant 0 : i32
    %c0_i32_1 = arith.constant 0 : i32
    return %c0_i32, %c0_i32_0 : i32, i32
  }
  func.func @transform_29(%arg0: i32) -> (i32, i32) {
    %c0_i32 = arith.constant 0 : i32
    %c0_i32_0 = arith.constant 0 : i32
    %c0_i32_1 = arith.constant 0 : i32
    return %c0_i32, %c0_i32_0 : i32, i32
  }
  func.func @transform_30(%arg0: i32) -> (i32, i32) {
    %c0_i32 = arith.constant 0 : i32
    %c0_i32_0 = arith.constant 0 : i32
    %c0_i32_1 = arith.constant 0 : i32
    return %c0_i32, %c0_i32_0 : i32, i32
  }
  func.func @transform_31(%arg0: i32) -> (i32, i32) {
    %c0_i32 = arith.constant 0 : i32
    %c0_i32_0 = arith.constant 0 : i32
    %c0_i32_1 = arith.constant 0 : i32
    return %c0_i32, %c0_i32_0 : i32, i32
  }
  func.func @transform_32(%arg0: i32) -> (i32, i32) {
    %c0_i32 = arith.constant 0 : i32
    %c0_i32_0 = arith.constant 0 : i32
    %c0_i32_1 = arith.constant 0 : i32
    return %c0_i32, %c0_i32_0 : i32, i32
  }
  func.func @transform_33(%arg0: i32) -> (i32, i32) {
    %c0_i32 = arith.constant 0 : i32
    %c0_i32_0 = arith.constant 0 : i32
    %c0_i32_1 = arith.constant 0 : i32
    return %c0_i32, %c0_i32_0 : i32, i32
  }
  func.func @transform_34(%arg0: i32) -> (i32, i32, i32) {
    %c0_i32 = arith.constant 0 : i32
    %c0_i32_0 = arith.constant 0 : i32
    %c0_i32_1 = arith.constant 0 : i32
    return %arg0, %c0_i32, %c0_i32_0 : i32, i32, i32
  }
}

</mosaic_0001>

<bundles_post_ra>
// kernel: quantum_transformer_forward.1
= control target key start
LH: loop header
LB: loop body
LE: loop exit
PB: predicated region body
PF: predicated region fallthrough
CT: control target
= control target key end

     0   :  { %s5683_s6 = smov 1   ;;  %s5684_s10 = smov 2   ;;  %s6415_s0 = inlined_call_operand.smem [shape: u32[35], index: -1, kind: input, shape index: {}] }
   0x1   :  { %s5733_s5 = sld [smem:[%s6415_s0]]   ;;  %s5685_s14 = smov 3  }
   0x2   :  { %s5738_s9 = sld [smem:[%s6415_s0 + %s5683_s6]]   ;;  %s5686_s18 = smov 4  }
   0x3   :  { %s5743_s13 = sld [smem:[%s6415_s0 + %s5684_s10]]   ;;  %s5687_s22 = smov 5  }
   0x4   :  { %s5748_s17 = sld [smem:[%s6415_s0 + %s5685_s14]]   ;;  %s5688_s26 = smov 6  }
   0x5   :  { %s5753_s21 = sld [smem:[%s6415_s0 + %s5686_s18]]   ;;  %s5689_s30 = smov 7  }
   0x6   :  { %s5758_s25 = sld [smem:[%s6415_s0 + %s5687_s22]]   ;;  %s5690_s4 = smov 8  }
   0x7   :  { %6438 = sst [smem:[#allocation5_spill]] %s5733_s5  ;;  %s5691_s10 = smov 9  }
   0x8   :  { %6439 = sst [smem:[#allocation6_spill]] %s5738_s9  ;;  %s5692_s15 = smov 10  }
   0x9   :  { %6440 = sst [smem:[#allocation7_spill]] %s5743_s13  ;;  %s5693_s20 = smov 11  }
   0xa   :  { %6441 = sst [smem:[#allocation8_spill]] %s5748_s17  ;;  %s5695_s1 = smov 13  }
   0xb   :  { %s5763_s29 = sld [smem:[%s6415_s0 + %s5688_s26]]   ;;  %s5694_s26 = smov 12  }
   0xc   :  { %s5768_s3 = sld [smem:[%s6415_s0 + %s5689_s30]]   ;;  %s5696_s7 = smov 14  }
   0xd   :  { %s5773_s8 = sld [smem:[%s6415_s0 + %s5690_s4]]   ;;  %s5698_s22 = smov 16  }
   0xe   :  { %s5778_s14 = sld [smem:[%s6415_s0 + %s5691_s10]]   ;;  %s5699_s28 = smov 17  }
   0xf   :  { %s5783_s19 = sld [smem:[%s6415_s0 + %s5692_s15]]   ;;  %s5697_s15 = smov 15  }
  0x10   :  { %s5788_s24 = sld [smem:[%s6415_s0 + %s5693_s20]]  }
  0x11   :  { %s5793_s30 = sld [smem:[%s6415_s0 + %s5694_s26]]  }
  0x12   :  { %6442 = sst [smem:[#allocation9_spill]] %s5768_s3 }
  0x13   :  { %6443 = sst [smem:[#allocation10_spill]] %s5773_s8 }
  0x14   :  { %6444 = sst [smem:[#allocation11_spill]] %s5778_s14 }
  0x15   :  { %s5798_s6 = sld [smem:[%s6415_s0 + %s5695_s1]]  }
  0x16   :  { %s5803_s12 = sld [smem:[%s6415_s0 + %s5696_s7]]   ;;  %s5700_s7 = smov 18  }
  0x17   :  { %6445 = sst [smem:[#allocation12_spill]] %s5793_s30 }
  0x18   :  { %s5808_s20 = sld [smem:[%s6415_s0 + %s5697_s15]]   ;;  %s5701_s15 = smov 19  }
  0x19   :  { %s5813_s27 = sld [smem:[%s6415_s0 + %s5698_s22]]   ;;  %s5702_s22 = smov 20  }
  0x1a   :  { %s5818_s4 = sld [smem:[%s6415_s0 + %s5699_s28]]   ;;  %s5703_s28 = smov 21  }
  0x1b   :  { %6446 = sst [smem:[#allocation13_spill]] %s5798_s6 }
  0x1c   :  { %6447 = sst [smem:[#allocation14_spill]] %s5803_s12 }
  0x1d   :  { %s5823_s6 = sld [smem:[%s6415_s0 + %s5700_s7]]   ;;  %s5704_s7 = smov 22  }
  0x1e   :  { %s5828_s30 = sld [smem:[%s6415_s0 + %s5701_s15]]   ;;  %s5705_s15 = smov 23  }
  0x1f   :  { %6448 = sst [smem:[#allocation15_spill]] %s5813_s27 }
  0x20   :  { %6449 = sst [smem:[#allocation16_spill]] %s5818_s4 }
  0x21   :  { %s5833_s27 = sld [smem:[%s6415_s0 + %s5702_s22]]   ;;  %s5706_s22 = smov 24  }
  0x22   :  { %s5838_s4 = sld [smem:[%s6415_s0 + %s5703_s28]]   ;;  %s5707_s28 = smov 25  }
  0x23   :  { %6450 = sst [smem:[#allocation17_spill]] %s5823_s6 }
  0x24   :  { %6451 = sst [smem:[#allocation18_spill]] %s5828_s30 }
  0x25   :  { %s5843_s6 = sld [smem:[%s6415_s0 + %s5704_s7]]   ;;  %s5708_s7 = smov 26  }
  0x26   :  { %s5848_s30 = sld [smem:[%s6415_s0 + %s5705_s15]]   ;;  %s5709_s15 = smov 27  }
  0x27   :  { %6452 = sst [smem:[#allocation19_spill]] %s5833_s27 }
  0x28   :  { %6453 = sst [smem:[#allocation20_spill]] %s5838_s4 }
  0x29   :  { %s5853_s27 = sld [smem:[%s6415_s0 + %s5706_s22]]   ;;  %s5710_s22 = smov 28  }
  0x2a   :  { %s5858_s4 = sld [smem:[%s6415_s0 + %s5707_s28]]   ;;  %s5711_s28 = smov 29  }
  0x2b   :  { %6454 = sst [smem:[#allocation21_spill]] %s5843_s6 }
  0x2c   :  { %6455 = sst [smem:[#allocation22_spill]] %s5848_s30 }
  0x2d   :  { %s5863_s6 = sld [smem:[%s6415_s0 + %s5708_s7]]   ;;  %s5712_s7 = smov 30  }
  0x2e   :  { %s5868_s30 = sld [smem:[%s6415_s0 + %s5709_s15]]   ;;  %s5713_s15 = smov 31  }
  0x2f   :  { %6456 = sst [smem:[#allocation23_spill]] %s5853_s27 }
  0x30   :  { %6457 = sst [smem:[#allocation24_spill]] %s5858_s4 }
  0x31   :  { %s5873_s27 = sld [smem:[%s6415_s0 + %s5710_s22]]   ;;  %s5714_s22 = smov 32  }
  0x32   :  { %s5878_s4 = sld [smem:[%s6415_s0 + %s5711_s28]]   ;;  %s5715_s28 = smov 33  }
  0x33   :  { %6458 = sst [smem:[#allocation25_spill]] %s5863_s6 }
  0x34   :  { %6459 = sst [smem:[#allocation26_spill]] %s5868_s30 }
  0x35   :  { %s5883_s6 = sld [smem:[%s6415_s0 + %s5712_s7]]   ;;  %s5716_s7 = smov 34  }
  0x36   :  { %s5888_s30 = sld [smem:[%s6415_s0 + %s5713_s15]]  }
  0x37   :  { %6460 = sst [smem:[#allocation27_spill]] %s5873_s27 }
  0x38   :  { %6461 = sst [smem:[#allocation28_spill]] %s5878_s4 }
  0x39   :  { %s5893_s27 = sld [smem:[%s6415_s0 + %s5714_s22]]  }
  0x3a   :  { %s5898_s4 = sld [smem:[%s6415_s0 + %s5715_s28]]  }
  0x3b   :  { %6462 = sst [smem:[#allocation29_spill]] %s5883_s6 }
  0x3c   :  { %s5903_s6 = sld [smem:[%s6415_s0 + %s5716_s7]]  }
  0x40   :  { %6463 = sst [smem:[#allocation30_spill]] %s5898_s4 }
  0x41   :  { %74 = vsyncpa [#allocation3], 0 }
  0x42   :  { %76 = vsyncpa [#allocation3 + $0x1], 0  ;;  %s5905_s15 = smov 0   ;;  %s5907_s16 = smov 0  }
  0x43   :  { %s5909_s18 = smov 0   ;;  %s5911_s22 = smov 0  }
  0x44 LB: > { %s6464_s13 = sld [smem:[#allocation7_spill]]  ;;  %s5926_s0 = sadd.s32 4294967295, %s5681_s22   ;;  %s5677_s18 = sphi %s5909_s18, %s6500_s18   ;;  %s5673_s16 = sphi %s5907_s16, %s6499_s16   ;;  %s5669_s15 = sphi %s5905_s15, %s6498_s15   ;;  %s5681_s22 = sphi %s5911_s22, %s6501_s22  }
  0x45   : > { %s6465_s12 = sld [smem:[#allocation14_spill]]  ;;  %s4994_s23 = sadd.s32 4294967294, %s5681_s22  }
  0x46   : > { %s6466_s8 = sld [smem:[#allocation10_spill]]  ;;  %s5930_s26 = sadd.s32 1, %s5681_s22  }
  0x47   : > { %s813_s28 = sadd.s32 1, %s5677_s18  ;;  %s810_s1 = ssub.s32 %s5681_s22, %s5930_s26 }
  0x48   : > { %p823_p0 = scmp.ne.s32.totalorder %s5677_s18, %s5673_s16  ;;  %p811_p1 = scmp.eq.s32.totalorder %s810_s1, 0 }
  0x49   : > { %p824_p2 = scmp.eq.s32.totalorder %s5926_s0, 1  ;;  %p829_p3 = scmp.ne.s32.totalorder %s5673_s16, %s5669_s15 }
  0x4a   : > { %p830_p4 = scmp.eq.s32.totalorder %s4994_s23, 1  ;;  %p4997_p7 = scmp.ge.s32.totalorder %s5681_s22, 1 }
  0x4b   : > { %s5941_s2 = scalar_select %p811_p1, %s5677_s18, %s813_s28  }
  0x4c   : > { %p5943_p5 = por %p824_p2, %p823_p0  ;;  %p5947_p6 = por %p830_p4, %p829_p3 }
  0x4d   : > { %p958_p8 = scmp.lt.s32.totalorder %s5681_s22, 3 }
  0x4f   : > { %p959_p9 = pnand %p4997_p7, %p958_p8 }
  0x50   : > { %p1047_p10 = scmp.lt.s32.totalorder (!%p959_p9), %s5926_s0, 1  ;;  %s6469_s5 = sld [smem:[#allocation5_spill]] (!%p959_p9) }
  0x51   : > { %962 = sbr.rel (%p959_p9) target bundleno = 5833 (0x16c9), region = 156  ;;  %s6470_s17 = sld [smem:[#allocation8_spill]] (!%p959_p9) }
  0x52   : > { %s6426_s1 = smov (!%p959_p9), 104   ;;  %s6471_s3 = sld [smem:[#allocation9_spill]] (!%p959_p9) }
  0x53   : > { %s6472_s9 = sld [smem:[#allocation6_spill]] (!%p959_p9) }
  0x54   : > { %s6474_s14 = sld [smem:[#allocation11_spill]] (!%p959_p9) }
  0x55   : > { %s6497_s4 = sld [smem:[#allocation30_spill]] (!%p959_p9) }
  0x56   : > { %v1059_v0 = vld [vmem:[%s6464_s13 + $0x18] sm:$0xff]  ;;  %v5717_v1 = vmov 0.0   ;;  %v1058_v2 = vld [vmem:[%s6464_s13 + $0x10] sm:$0xff]  ;;  %vm5718_vm0 = vmmov 0   ;;  %s5960_s11 = scalar_select %p1047_p10, %s5926_s0, 1  ;;  %v1057_v3 = vld [vmem:[%s6464_s13 + $0x8] sm:$0xff] }
  0x57   : > { %5200 = vmatprep.subr.mxu0 %v5717_v1  ;;  %5208 = vmatprep.mubr.msk.f32.mxu0 %vm5718_vm0, %v5717_v1  ;;  %v1056_v4 = vld [vmem:[%s6464_s13] sm:$0xff]  ;;  %vm1067_vm1 = vcmask 261120   ;;  %vm1150_vm2 = vcmask 64512  }
  0x58   : > { %5201 = vmatpush3.msra.mxu0 %v1059_v0  ;;  %5211 = vmatprep.subr.mxu1 %v5717_v1  ;;  %s6421_s23 = sshll.u32 %s5960_s11, 3  ;;  %v5001_v6 = vld [vmem:[%s6470_s17] ss:$0 sm:$0xff] }
  0x59   : > { %5202 = vmatprep.subr.mxu0 %v5717_v1  ;;  %5213 = vmatprep.mubr.msk.f32.mxu1 %vm5718_vm0, %v5717_v1  ;;  %s1050_s28 = scalar_lea.vmem %s6469_s5, %s6421_s23  ;;  %s6422_s23 = smov 96  }
  0x5a   : > { %5203 = vmatpush3.msra.mxu0 %v1058_v2  ;;  %v5973_v5 = vld [vmem:[%s1050_s28] sm:$0xff]  ;;  %s6430_s28 = smov 120   ;;  %s6428_s5 = smov 112  }
  0x5b   : > { %5204 = vmatprep.subr.mxu0 %v5717_v1 }
  0x5c   : > { %5205 = vmatpush3.msra.mxu0 %v1057_v3 }
  0x5d   : > { %5206 = vmatprep.subr.mxu0 %v5717_v1 }
  0x5e   : > { %5207 = vmatpush3.msra.mxu0 %v1056_v4  ;;  %v1805_v4 = vld [vmem:[%s5753_s21] sm:$0xff] }
  0x5f   : > { %5209 = vmatmul.mubr.msk.f32.vlgmr.msra.gmra.mxu0 %vm1067_vm1, %v5973_v5  ;;  %5231 = vmatprep.subr.mxu0 %v5717_v1 }
  0x60   : > { %5233 = vmatprep.mubr.msk.f32.mxu0 %vm5718_vm0, %v5717_v1 }
 0x11f   : > { %v1137_v7 = vpop.f32.mrf.mxu0 }
 0x120   : > { %v1138_v8 = vadd.f32 %v5001_v6, %v1137_v7 }
 0x121   : > { %v5210_v9 = vpop.f32.mrf.mxu0 }
 0x122   : > { %1146 = vrot.lane.b32.xlu1 %v1138_v8, %s6426_s1  ;;  %1142 = vrot.lane.b32.xlu0 %v1138_v8, %s6430_s28  ;;  %v1807_v9 = vld [vmem:[%s5753_s21 + $0x10] sm:$0xff] }
 0x126   : > { %1148 = vrot.lane.b32.xlu1 %v1138_v8, %s6422_s23  ;;  %1144 = vrot.lane.b32.xlu0 %v1138_v8, %s6428_s5 }
 0x194   : > { %v5986_v10 = vpop.permute.xlu1 %1146  ;;  %v1143_v11 = vpop.permute.xlu0 %1142 }
 0x195   : > { %1225 = vrot.lane.b32.xlu0 %v1143_v11, %s6422_s23 }
 0x198   : > { %v1149_v12 = vpop.permute.xlu1 %1148  ;;  %v5989_v13 = vpop.permute.xlu0 %1144 }
 0x199   : > { %5212 = vmatpush3.xpose.msk.msra.mxu1 %vm1150_vm2, %v1149_v12  ;;  %1377 = vrot.lane.b32.xlu0 %v5986_v10, %s6422_s23  ;;  %v1808_v12 = vld [vmem:[%s5753_s21 + $0x18] sm:$0xff] }
 0x19a   : > { %1301 = vrot.lane.b32.xlu1 %v5989_v13, %s6422_s23  ;;  %5216 = vmatprep.subr.mxu1 %v5717_v1  ;;  %s6424_s23 = smov 64  }
 0x19c   : > { %5214 = vmatmul.mubr.msk.f32.vlgmr.msra.gmra.mxu1 %vm1150_vm2, %v1138_v8 }
 0x19d   : > { %5218 = vmatprep.mubr.msk.f32.mxu1 %vm5718_vm0, %v5717_v1 }
 0x207   : > { %v1226_v14 = vpop.permute.xlu0 %1225 }
 0x208   : > { %5217 = vmatpush3.xpose.msk.msra.mxu1 %vm1150_vm2, %v1226_v14 }
 0x209   : > { %5221 = vmatprep.subr.mxu1 %v5717_v1 }
 0x20b   : > { %5219 = vmatmul.mubr.msk.f32.vlgmr.msra.gmra.mxu1 %vm1150_vm2, %v1143_v11  ;;  %v1378_v16 = vpop.permute.xlu0 %1377 }
 0x20c   : > { %v1302_v15 = vpop.permute.xlu1 %1301  ;;  %5223 = vmatprep.mubr.msk.f32.mxu1 %vm5718_vm0, %v5717_v1 }
 0x20d   : > { %5222 = vmatpush3.xpose.msk.msra.mxu1 %vm1150_vm2, %v1302_v15 }
 0x20e   : > { %5226 = vmatprep.subr.mxu1 %v5717_v1 }
 0x210   : > { %5224 = vmatmul.mubr.msk.f32.vlgmr.msra.gmra.mxu1 %vm1150_vm2, %v5989_v13 }
 0x211   : > { %5227 = vmatpush3.xpose.msk.msra.mxu1 %vm1150_vm2, %v1378_v16  ;;  %5228 = vmatprep.mubr.msk.f32.mxu1 %vm5718_vm0, %v5717_v1 }
 0x212   : > { %5236 = vmatprep.subr.mxu1 %v5717_v1 }
 0x214   : > { %5229 = vmatmul.mubr.msk.f32.vlgmr.msra.gmra.mxu1 %vm1150_vm2, %v5986_v10 }
 0x215   : > { %5238 = vmatprep.mubr.msk.f32.mxu1 %vm5718_vm0, %v5717_v1 }
 0x25c   : > { %v1221_v17 = vpop.f32.mrf.mxu1 }
 0x25d   : > { %v1453_v18 = vmul.f32 0.35355338, %v1221_v17 }
 0x25e   : > { %v5215_v19 = vpop.f32.mrf.mxu1 }
 0x25f   : > { %v1457_v20 = vsel %vm1150_vm2, %v1453_v18, -inf }
 0x260   : > { %1458 = vmax.xlane.f32.xlu1 %v1457_v20 }
 0x2cb   : > { %v1297_v21 = vpop.f32.mrf.mxu1 }
 0x2cc   : > { %v1454_v22 = vmul.f32 0.35355338, %v1297_v21 }
 0x2cd   : > { %v5220_v23 = vpop.f32.mrf.mxu1 }
 0x2ce   : > { %v1460_v24 = vsel %vm1150_vm2, %v1454_v22, -inf }
 0x2cf   : > { %1461 = vmax.xlane.f32.xlu0 %v1460_v24 }
 0x2d0   : > { %v1373_v25 = vpop.f32.mrf.mxu1 }
 0x2d1   : > { %v1455_v26 = vmul.f32 0.35355338, %v1373_v25 }
 0x2d2   : > { %v5225_v27 = vpop.f32.mrf.mxu1 }
 0x2d3   : > { %v1463_v28 = vsel %vm1150_vm2, %v1455_v26, -inf }
 0x2d4   : > { %1464 = vmax.xlane.f32.xlu0 %v1463_v28  ;;  %v1449_v29 = vpop.f32.mrf.mxu1  ;;  %v5019_v28 = vld [vmem:[%s5758_s25] ss:$0 sm:$0xff] }
 0x2d5   : > { %v1456_v30 = vmul.f32 0.35355338, %v1449_v29 }
 0x2d6   : > { %v5230_v31 = vpop.f32.mrf.mxu1 }
 0x2d7   : > { %v1466_v32 = vsel %vm1150_vm2, %v1456_v30, -inf }
 0x2d8   : > { %1467 = vmax.xlane.f32.xlu1 %v1466_v32 }
 0x2e9   : > { %1577 = vrot.lane.b32.xlu1 %v1143_v11, %s6424_s23  ;;  %v1459_v33 = vpop.xlane.xlu1 %1458 }
 0x2ea   : > { %1501 = vrot.lane.b32.xlu0 %v1138_v8, %s6424_s23  ;;  %v1469_v34 = vsub.f32 %v1453_v18, %v1459_v33  ;;  %v1806_v8 = vld [vmem:[%s5753_s21 + $0x8] sm:$0xff] }
 0x2ec   : > { %v1473_v35 = vmul.f32 1.442695, %v1469_v34 }
 0x2ee   : > { %5559 = vpow2.f32 %v1473_v35 }
 0x2fb   : > { %v5560_v36 = vpop.eup %5559 }
 0x2fc   : > { %v1481_v37 = vsel %vm1150_vm2, %v5560_v36, 0.0 }
 0x309   : > { %1482 = vadd.xlane.f32.xlu0 %v1481_v37 }
 0x358   : > { %v1462_v38 = vpop.xlane.xlu0 %1461 }
 0x359   : > { %v1470_v39 = vsub.f32 %v1454_v22, %v1462_v38 }
 0x35b   : > { %v1475_v40 = vmul.f32 1.442695, %v1470_v39  ;;  %v2146_v39 = vld [vmem:[%s6466_s8 + $0x18] sm:$0xff] }
 0x35d   : > { %5561 = vpow2.f32 %v1475_v40  ;;  %v1465_v41 = vpop.xlane.xlu0 %1464  ;;  %v2145_v40 = vld [vmem:[%s6466_s8 + $0x10] sm:$0xff] }
 0x35e   : > { %v1471_v42 = vsub.f32 %v1455_v26, %v1465_v41  ;;  %v2143_v41 = vld [vmem:[%s6466_s8] sm:$0xff] }
 0x360   : > { %v1477_v43 = vmul.f32 1.442695, %v1471_v42 }
 0x361   : > { %v1468_v44 = vpop.xlane.xlu1 %1467  ;;  %v1502_v45 = vpop.permute.xlu0 %1501 }
 0x362   : > { %5563 = vpow2.f32 %v1477_v43  ;;  %v1472_v46 = vsub.f32 %v1456_v30, %v1468_v44  ;;  %5232 = vmatpush3.msra.mxu0 %v1502_v45 }
 0x363   : > { %5241 = vmatprep.subr.mxu0 %v5717_v1 }
 0x364   : > { %v1479_v47 = vmul.f32 1.442695, %v1472_v46  ;;  %v5020_v46 = vld [vmem:[%s5763_s29] ss:$0 sm:$0xff] }
 0x365   : > { %v1578_v48 = vpop.permute.xlu1 %1577 }
 0x366   : > { %5565 = vpow2.f32 %v1479_v47  ;;  %5237 = vmatpush3.msra.mxu1 %v1578_v48  ;;  %v5021_v48 = vld [vmem:[%s6471_s3] ss:$0 sm:$0xff]  ;;  %s6480_s3 = sld [smem:[#allocation12_spill]] }
 0x367   : > { %5246 = vmatprep.subr.mxu1 %v5717_v1 }
 0x36a   : > { %v5562_v49 = vpop.eup %5561 }
 0x36b   : > { %v1484_v50 = vsel %vm1150_vm2, %v5562_v49, 0.0 }
 0x36c   : > { %1485 = vadd.xlane.f32.xlu1 %v1484_v50 }
 0x36f   : > { %v5564_v51 = vpop.eup %5563 }
 0x370   : > { %v1487_v52 = vsel %vm1150_vm2, %v5564_v51, 0.0 }
 0x371   : > { %1488 = vadd.xlane.f32.xlu0 %v1487_v52  ;;  %v2345_v52 = vld [vmem:[%s6465_s12 + $0x10] sm:$0xff] }
 0x373   : > { %v5566_v53 = vpop.eup %5565 }
 0x374   : > { %v1490_v54 = vsel %vm1150_vm2, %v5566_v53, 0.0 }
 0x375   : > { %1491 = vadd.xlane.f32.xlu1 %v1490_v54  ;;  %v2343_v54 = vld [vmem:[%s6465_s12] sm:$0xff] }
 0x386   : > { %1653 = vrot.lane.b32.xlu1 %v5989_v13, %s6424_s23 }
 0x387   : > { %1729 = vrot.lane.b32.xlu0 %v5986_v10, %s6424_s23  ;;  %s6473_s23 = sshll.u32 %s5960_s11, 3  ;;  %s6475_s11 = smov 104  }
 0x388   : > { %s1054_s1 = scalar_lea.vmem %s6472_s9, %s6473_s23  ;;  %s6476_s23 = smov 96  }
 0x389   : > { %s6487_s9 = sld [smem:[#allocation18_spill]] }
 0x392   : > { %v1483_v55 = vpop.xlane.xlu0 %1482 }
 0x393   : > { %5567 = vrcp.f32 %v1483_v55  ;;  %v6096_v55 = vld [vmem:[%s1054_s1] sm:$0xff]  ;;  %s6477_s1 = smov 64  }
 0x3a0   : > { %v5568_v56 = vpop.eup %5567 }
 0x3a1   : > { %v1497_v57 = vmul.f32 %v5568_v56, %v5560_v36  ;;  %v2231_v56 = vld [vmem:[%s5783_s19 + $0x18] sm:$0xff] }
 0x3a3   : > { %5234 = vmatmul.mubr.msk.f32.vlgmr.msra.gmra.mxu0 %vm1150_vm2, %v1497_v57  ;;  %v2230_v57 = vld [vmem:[%s5783_s19 + $0x10] sm:$0xff] }
 0x3a4   : > { %5243 = vmatprep.mubr.msk.f32.mxu0 %vm5718_vm0, %v5717_v1 }
 0x3f5   : > { %v1486_v58 = vpop.xlane.xlu1 %1485 }
 0x3f6   : > { %5569 = vrcp.f32 %v1486_v58  ;;  %v2229_v58 = vld [vmem:[%s5783_s19 + $0x8] sm:$0xff] }
 0x3fa   : > { %v1489_v59 = vpop.xlane.xlu0 %1488 }
 0x3fb   : > { %5571 = vrcp.f32 %v1489_v59  ;;  %v2228_v59 = vld [vmem:[%s5783_s19] sm:$0xff] }
 0x3fe   : > { %v1492_v60 = vpop.xlane.xlu1 %1491  ;;  %v1730_v0 = vpop.permute.xlu0 %1729 }
 0x3ff   : > { %5573 = vrcp.f32 %v1492_v60  ;;  %v5022_v60 = vld [vmem:[%s6474_s14] ss:$0 sm:$0xff]  ;;  %s5724_s14 = smov [#allocation2]  }
 0x400   : > { %s5625_s17 = sshll.u32 %s5724_s14, 4  ;;  %s5626_s17 = int_to_ptr.vmem [resolvable:$false] %s5625_s17 }
 0x402   : > { %v1654_v61 = vpop.permute.xlu1 %1653 }
 0x403   : > { %v5570_v62 = vpop.eup %5569  ;;  %5242 = vmatpush3.msra.mxu0 %v1654_v61 }
 0x404   : > { %v1498_v63 = vmul.f32 %v5570_v62, %v5562_v49  ;;  %5251 = vmatprep.subr.mxu0 %v5717_v1 }
 0x406   : > { %5239 = vmatmul.mubr.msk.f32.vlgmr.msra.gmra.mxu1 %vm1150_vm2, %v1498_v63 }
 0x407   : > { %5247 = vmatpush3.msra.mxu1 %v1730_v0  ;;  %5248 = vmatprep.mubr.msk.f32.mxu1 %vm5718_vm0, %v5717_v1  ;;  %v5028_v0 = vld [vmem:[%s5808_s20] ss:$0 sm:$0xff] }
 0x408   : > { %v5572_v2 = vpop.eup %5571  ;;  %5256 = vmatprep.subr.mxu1 %v5717_v1 }
 0x409   : > { %v1499_v3 = vmul.f32 %v5572_v2, %v5564_v51  ;;  %v2346_v51 = vld [vmem:[%s6465_s12 + $0x18] sm:$0xff] }
 0x40b   : > { %5244 = vmatmul.mubr.msk.f32.vlgmr.msra.gmra.mxu0 %vm1150_vm2, %v1499_v3 }
 0x40c   : > { %v5574_v6 = vpop.eup %5573  ;;  %5252 = vmatpush3.msra.mxu0 %v1805_v4  ;;  %5253 = vmatprep.mubr.msk.f32.mxu0 %vm5718_vm0, %v5717_v1 }
 0x40d   : > { %v1500_v7 = vmul.f32 %v5574_v6, %v5566_v53  ;;  %5261 = vmatprep.subr.mxu0 %v5717_v1  ;;  %v2344_v53 = vld [vmem:[%s6465_s12 + $0x8] sm:$0xff] }
 0x40f   : > { %5249 = vmatmul.mubr.msk.f32.vlgmr.msra.gmra.mxu1 %vm1150_vm2, %v1500_v7 }
 0x410   : > { %5258 = vmatprep.mubr.msk.f32.mxu1 %vm5718_vm0, %v5717_v1  ;;  %5257 = vmatpush3.msra.mxu1 %v1806_v8 }
 0x411   : > { %5266 = vmatprep.subr.mxu1 %v5717_v1 }
 0x463   : > { %v1573_v10 = vpop.f32.mrf.mxu0 }
 0x464   : > { %5254 = vmatmul.mubr.msk.f32.vlgmr.msra.gmra.mxu0 %vm1150_vm2, %v1573_v10 }
 0x465   : > { %v5235_v11 = vpop.f32.mrf.mxu0  ;;  %5262 = vmatpush3.msra.mxu0 %v1807_v9  ;;  %5263 = vmatprep.mubr.msk.f32.mxu0 %vm5718_vm0, %v5717_v1 }
 0x466   : > { %5271 = vmatprep.subr.mxu0 %v5717_v1 }
 0x4c6   : > { %v1649_v13 = vpop.f32.mrf.mxu1 }
 0x4c7   : > { %5259 = vmatmul.mubr.msk.f32.vlgmr.msra.gmra.mxu1 %vm1150_vm2, %v1649_v13 }
 0x4c8   : > { %v5240_v14 = vpop.f32.mrf.mxu1  ;;  %5267 = vmatpush3.msra.mxu1 %v1808_v12  ;;  %5268 = vmatprep.mubr.msk.f32.mxu1 %vm5718_vm0, %v5717_v1 }
 0x4c9   : > { %5282 = vmatprep.subr.mxu1 %v5717_v1 }
 0x4cb   : > { %v1725_v15 = vpop.f32.mrf.mxu0 }
 0x4cc   : > { %5264 = vmatmul.mubr.msk.f32.vlgmr.msra.gmra.mxu0 %vm1150_vm2, %v1725_v15 }
 0x4cd   : > { %v5245_v16 = vpop.f32.mrf.mxu0  ;;  %5279 = vmatprep.mubr.msk.f32.mxu0 %vm5718_vm0, %v5717_v1  ;;  %5272 = vmatpush3.msra.mxu0 %v2146_v39 }
 0x4ce   : > { %5273 = vmatprep.subr.mxu0 %v5717_v1 }
 0x4cf   : > { %v1801_v17 = vpop.f32.mrf.mxu1  ;;  %5274 = vmatpush3.msra.mxu0 %v2145_v40 }
 0x4d0   : > { %5269 = vmatmul.mubr.msk.f32.vlgmr.msra.gmra.mxu1 %vm1150_vm2, %v1801_v17  ;;  %5275 = vmatprep.subr.mxu0 %v5717_v1 }
 0x4d1   : > { %v5250_v18 = vpop.f32.mrf.mxu1  ;;  %5290 = vmatprep.mubr.msk.f32.mxu1 %vm5718_vm0, %v5717_v1  ;;  %5283 = vmatpush3.msra.mxu1 %v2231_v56 }
 0x4d2   : > { %5284 = vmatprep.subr.mxu1 %v5717_v1 }
 0x4d3   : > { %5285 = vmatpush3.msra.mxu1 %v2230_v57 }
 0x4d4   : > { %5286 = vmatprep.subr.mxu1 %v5717_v1 }
 0x4d5   : > { %5287 = vmatpush3.msra.mxu1 %v2229_v58 }
 0x4d6   : > { %5288 = vmatprep.subr.mxu1 %v5717_v1 }
 0x4d7   : > { %5289 = vmatpush3.msra.mxu1 %v2228_v59 }
 0x4d8   : > { %5304 = vmatprep.subr.mxu1 %v5717_v1 }
 0x524   : > { %v1878_v19 = vpop.f32.mrf.mxu0 }
 0x526   : > { %v5255_v20 = vpop.f32.mrf.mxu0 }
 0x587   : > { %v1951_v21 = vpop.f32.mrf.mxu1 }
 0x588   : > { %v2101_v24 = vadd.f32 %v1951_v21, %v1878_v19 }
 0x589   : > { %v5260_v22 = vpop.f32.mrf.mxu1 }
 0x58c   : > { %v2024_v23 = vpop.f32.mrf.mxu0 }
 0x58d   : > { %v2102_v26 = vadd.f32 %v2101_v24, %v2024_v23 }
 0x58e   : > { %v5265_v25 = vpop.f32.mrf.mxu0 }
 0x590   : > { %v2097_v27 = vpop.f32.mrf.mxu1 }
 0x591   : > { %v2103_v29 = vadd.f32 %v2102_v26, %v2097_v27 }
 0x592   : > { %v5270_v30 = vpop.f32.mrf.mxu1 }
 0x593   : > { %v2111_v31 = vadd.f32 %v5019_v28, %v2103_v29 }
 0x595   : > { %v2112_v32 = vadd.f32 %v2111_v31, %v5973_v5  ;;  %v2144_v5 = vld [vmem:[%s6466_s8 + $0x8] sm:$0xff]  ;;  %s6482_s8 = sld [smem:[#allocation16_spill]] }
 0x596   : > { %5276 = vmatpush3.msra.mxu0 %v2144_v5 }
 0x597   : > { %v2113_v33 = vsel %vm1067_vm1, %v2112_v32, 0.0  ;;  %5277 = vmatprep.subr.mxu0 %v5717_v1 }
 0x598   : > { %2114 = vadd.xlane.f32.xlu1 %v2113_v33  ;;  %5278 = vmatpush3.msra.mxu0 %v2143_v41 }
 0x599   : > { %5293 = vmatprep.subr.mxu0 %v5717_v1 }
 0x621   : > { %v2115_v34 = vpop.xlane.xlu1 %2114 }
 0x622   : > { %v2117_v35 = vmul.f32 0.03125, %v2115_v34 }
 0x624   : > { %v2118_v36 = vsub.f32 %v2112_v32, %v2117_v35 }
 0x626   : > { %v2119_v37 = vmul.f32 %v2118_v36, %v2118_v36 }
 0x628   : > { %v2120_v38 = vsel %vm1067_vm1, %v2119_v37, 0.0 }
 0x629   : > { %2121 = vadd.xlane.f32.xlu0 %v2120_v38 }
 0x6b2   : > { %v2122_v42 = vpop.xlane.xlu0 %2121 }
 0x6b3   : > { %v2123_v43 = vmul.f32 0.03125, %v2122_v42 }
 0x6b5   : > { %v2124_v44 = vadd.f32 1e-05, %v2123_v43 }
 0x6b7   : > { %5575 = vrsqrt.f32 %v2124_v44 }
 0x6c4   : > { %v5576_v45 = vpop.eup %5575 }
 0x6c5   : > { %v2126_v47 = vmul.f32 %v5576_v45, %v2118_v36 }
 0x6c7   : > { %v2134_v49 = vmul.f32 %v5020_v46, %v2126_v47 }
 0x6c9   : > { %v6081_v50 = vadd.f32 %v5021_v48, %v2134_v49 }
 0x6cb   : > { %5280 = vmatmul.mubr.msk.f32.vlgmr.msra.gmra.mxu0 %vm1067_vm1, %v6081_v50 }
 0x6cc   : > { %5294 = vmatpush3.msra.mxu0 %v2346_v51  ;;  %5301 = vmatprep.mubr.msk.f32.mxu0 %vm5718_vm0, %v5717_v1 }
 0x6cd   : > { %5295 = vmatprep.subr.mxu0 %v5717_v1 }
 0x6ce   : > { %5296 = vmatpush3.msra.mxu0 %v2345_v52 }
 0x6cf   : > { %5297 = vmatprep.subr.mxu0 %v5717_v1 }
 0x6d0   : > { %5298 = vmatpush3.msra.mxu0 %v2344_v53 }
 0x6d1   : > { %5299 = vmatprep.subr.mxu0 %v5717_v1 }
 0x6d2   : > { %5300 = vmatpush3.msra.mxu0 %v2343_v54  ;;  %v5024_v54 = vld [vmem:[%s5788_s24] ss:$0 sm:$0xff] }
 0x6d3   : > { %5302 = vmatmul.mubr.msk.f32.vlgmr.msra.gmra.mxu0 %vm1067_vm1, %v6096_v55  ;;  %5314 = vmatprep.subr.mxu0 %v5717_v1 }
 0x6d4   : > { %5316 = vmatprep.mubr.msk.f32.mxu0 %vm5718_vm0, %v5717_v1 }
 0x78b   : > { %v2223_v61 = vpop.f32.mrf.mxu0 }
 0x78c   : > { %v2224_v62 = vadd.f32 %v5022_v60, %v2223_v61 }
 0x78d   : > { %v5281_v63 = vpop.f32.mrf.mxu0 }
 0x78e   : > { %5577 = vtanh.f32 %v2224_v62 }
 0x793   : > { %v2423_v2 = vpop.f32.mrf.mxu0 }
 0x794   : > { %v2424_v3 = vadd.f32 %v5028_v0, %v2423_v2 }
 0x795   : > { %v5303_v4 = vpop.f32.mrf.mxu0 }
 0x796   : > { %2430 = vrot.lane.b32.xlu1 %v2424_v3, %s6428_s5  ;;  %2428 = vrot.lane.b32.xlu0 %v2424_v3, %s6430_s28  ;;  %s6478_s5 = sld [smem:[#allocation15_spill]] }
 0x797   : > { %s6479_s28 = sld [smem:[#allocation19_spill]] }
 0x79a   : > { %2432 = vrot.lane.b32.xlu1 %v2424_v3, %s6475_s11  ;;  %2434 = vrot.lane.b32.xlu0 %v2424_v3, %s6476_s23 }
 0x79b   : > { %v5578_v6 = vpop.eup %5577 }
 0x79c   : > { %5291 = vmatmul.mubr.msk.f32.vlgmr.msra.gmra.mxu1 %vm1067_vm1, %v5578_v6 }
 0x79d   : > { %5306 = vmatprep.mubr.msk.f32.mxu1 %vm5718_vm0, %v5717_v1 }
 0x808   : > { %v6121_v7 = vpop.permute.xlu1 %2430  ;;  %v6123_v8 = vpop.permute.xlu0 %2428 }
 0x809   : > { %2586 = vrot.lane.b32.xlu0 %v6121_v7, %s6476_s23  ;;  %2510 = vrot.lane.b32.xlu1 %v6123_v8, %s6476_s23 }
 0x80c   : > { %v6129_v9 = vpop.permute.xlu1 %2432  ;;  %v2435_v10 = vpop.permute.xlu0 %2434 }
 0x80d   : > { %2662 = vrot.lane.b32.xlu1 %v6129_v9, %s6476_s23  ;;  %5305 = vmatpush3.xpose.msk.msra.mxu1 %vm1150_vm2, %v2435_v10 }
 0x80e   : > { %5309 = vmatprep.subr.mxu1 %v5717_v1 }
 0x810   : > { %5307 = vmatmul.mubr.msk.f32.vlgmr.msra.gmra.mxu1 %vm1150_vm2, %v2424_v3 }
 0x811   : > { %5311 = vmatprep.mubr.msk.f32.mxu1 %vm5718_vm0, %v5717_v1 }
 0x85c   : > { %v6138_v11 = vpop.f32.mrf.mxu1 }
 0x85d   : > { %v2309_v57 = vadd.f32 %v5024_v54, %v6138_v11 }
 0x85e   : > { %v5292_v12 = vpop.f32.mrf.mxu1 }
 0x85f   : > { %v2312_v59 = vadd.f32 %v2309_v57, %v6081_v50 }
 0x861   : > { %v2313_v60 = vsel %vm1067_vm1, %v2312_v59, 0.0 }
 0x87b   : > { %v2511_v13 = vpop.permute.xlu1 %2510  ;;  %v2587_v14 = vpop.permute.xlu0 %2586 }
 0x87c   : > { %5310 = vmatpush3.xpose.msk.msra.mxu1 %vm1150_vm2, %v2511_v13  ;;  %5315 = vmatpush3.xpose.msk.msra.mxu0 %vm1150_vm2, %v2587_v14 }
 0x87d   : > { %5319 = vmatprep.subr.mxu1 %v5717_v1  ;;  %5324 = vmatprep.subr.mxu0 %v5717_v1 }
 0x87f   : > { %v2663_v15 = vpop.permute.xlu1 %2662  ;;  %5312 = vmatmul.mubr.msk.f32.vlgmr.msra.gmra.mxu1 %vm1150_vm2, %v6123_v8  ;;  %5317 = vmatmul.mubr.msk.f32.vlgmr.msra.gmra.mxu0 %vm1150_vm2, %v6121_v7 }
 0x880   : > { %5320 = vmatpush3.xpose.msk.msra.mxu1 %vm1150_vm2, %v2663_v15  ;;  %5321 = vmatprep.mubr.msk.f32.mxu1 %vm5718_vm0, %v5717_v1 }
 0x881   : > { %5326 = vmatprep.mubr.msk.f32.mxu0 %vm5718_vm0, %v5717_v1  ;;  %5329 = vmatprep.subr.mxu1 %v5717_v1 }
 0x883   : > { %5322 = vmatmul.mubr.msk.f32.vlgmr.msra.gmra.mxu1 %vm1150_vm2, %v6129_v9 }
 0x884   : > { %5331 = vmatprep.mubr.msk.f32.mxu1 %vm5718_vm0, %v5717_v1 }
 0x8d0   : > { %v2506_v16 = vpop.f32.mrf.mxu1 }
 0x8d1   : > { %v2738_v17 = vmul.f32 0.35355338, %v2506_v16  ;;  %v3091_v16 = vld [vmem:[%s6478_s5 + $0x8] sm:$0xff] }
 0x8d2   : > { %v5308_v18 = vpop.f32.mrf.mxu1 }
 0x8d3   : > { %v2742_v19 = vsel %vm1150_vm2, %v2738_v17, -inf }
 0x8d4   : > { %2743 = vmax.xlane.f32.xlu0 %v2742_v19 }
 0x93f   : > { %v2582_v20 = vpop.f32.mrf.mxu1  ;;  %v2658_v21 = vpop.f32.mrf.mxu0 }
 0x940   : > { %v2739_v22 = vmul.f32 0.35355338, %v2582_v20  ;;  %v2740_v23 = vmul.f32 0.35355338, %v2658_v21 }
 0x941   : > { %v5313_v24 = vpop.f32.mrf.mxu1  ;;  %v5318_v25 = vpop.f32.mrf.mxu0 }
 0x942   : > { %v2745_v26 = vsel %vm1150_vm2, %v2739_v22, -inf  ;;  %v2748_v27 = vsel %vm1150_vm2, %v2740_v23, -inf }
 0x943   : > { %2746 = vmax.xlane.f32.xlu1 %v2745_v26  ;;  %v2734_v28 = vpop.f32.mrf.mxu1  ;;  %2749 = vmax.xlane.f32.xlu0 %v2748_v27 }
 0x944   : > { %v2741_v29 = vmul.f32 0.35355338, %v2734_v28  ;;  %v3430_v28 = vld [vmem:[%s6479_s28 + $0x18] sm:$0xff] }
 0x945   : > { %v5323_v30 = vpop.f32.mrf.mxu1 }
 0x946   : > { %v2751_v31 = vsel %vm1150_vm2, %v2741_v29, -inf  ;;  %v3429_v30 = vld [vmem:[%s6479_s28 + $0x10] sm:$0xff] }
 0x947   : > { %2752 = vmax.xlane.f32.xlu0 %v2751_v31 }
 0x954   : > { %2786 = vrot.lane.b32.xlu1 %v2424_v3, %s6477_s1 }
 0x95d   : > { %v2744_v32 = vpop.xlane.xlu0 %2743 }
 0x95e   : > { %v2754_v33 = vsub.f32 %v2738_v17, %v2744_v32  ;;  %v3092_v17 = vld [vmem:[%s6478_s5 + $0x10] sm:$0xff]  ;;  %v3428_v32 = vld [vmem:[%s6479_s28 + $0x8] sm:$0xff] }
 0x960   : > { %v2758_v34 = vmul.f32 1.442695, %v2754_v33  ;;  %v3427_v33 = vld [vmem:[%s6479_s28] sm:$0xff] }
 0x962   : > { %5579 = vpow2.f32 %v2758_v34 }
 0x96f   : > { %v5580_v35 = vpop.eup %5579 }
 0x970   : > { %v2766_v36 = vsel %vm1150_vm2, %v5580_v35, 0.0 }
 0x978   : > { %2767 = vadd.xlane.f32.xlu1 %v2766_v36 }
 0x9cc   : > { %v2747_v37 = vpop.xlane.xlu1 %2746  ;;  %v2750_v38 = vpop.xlane.xlu0 %2749 }
 0x9cd   : > { %v2755_v39 = vsub.f32 %v2739_v22, %v2747_v37  ;;  %v2756_v40 = vsub.f32 %v2740_v23, %v2750_v38  ;;  %v3093_v23 = vld [vmem:[%s6478_s5 + $0x18] sm:$0xff] }
 0x9cf   : > { %v2760_v5 = vmul.f32 1.442695, %v2755_v39  ;;  %v2762_v41 = vmul.f32 1.442695, %v2756_v40 }
 0x9d0   : > { %v2787_v42 = vpop.permute.xlu1 %2786  ;;  %v2753_v43 = vpop.xlane.xlu0 %2752 }
 0x9d1   : > { %5581 = vpow2.f32 %v2760_v5  ;;  %v2757_v44 = vsub.f32 %v2741_v29, %v2753_v43  ;;  %5325 = vmatpush3.msra.mxu0 %v2787_v42 }
 0x9d2   : > { %5583 = vpow2.f32 %v2762_v41  ;;  %5334 = vmatprep.subr.mxu0 %v5717_v1 }
 0x9d3   : > { %v2764_v45 = vmul.f32 1.442695, %v2757_v44 }
 0x9d5   : > { %5585 = vpow2.f32 %v2764_v45 }
 0x9de   : > { %v5582_v46 = vpop.eup %5581 }
 0x9df   : > { %v5584_v47 = vpop.eup %5583  ;;  %v2769_v48 = vsel %vm1150_vm2, %v5582_v46, 0.0 }
 0x9e0   : > { %2770 = vadd.xlane.f32.xlu0 %v2769_v48  ;;  %v2772_v49 = vsel %vm1150_vm2, %v5584_v47, 0.0  ;;  %v5046_v48 = vld [vmem:[%s6482_s8] ss:$0 sm:$0xff]  ;;  %s6485_s8 = smov 112  }
 0x9e1   : > { %2773 = vadd.xlane.f32.xlu1 %v2772_v49 }
 0x9e2   : > { %v5586_v51 = vpop.eup %5585 }
 0x9e3   : > { %v2775_v52 = vsel %vm1150_vm2, %v5586_v51, 0.0 }
 0x9e4   : > { %2776 = vadd.xlane.f32.xlu0 %v2775_v52 }
 0x9f2   : > { %2938 = vrot.lane.b32.xlu1 %v6121_v7, %s6477_s1  ;;  %v3090_v7 = vld [vmem:[%s6478_s5] sm:$0xff]  ;;  %s6481_s5 = sld [smem:[#allocation13_spill]] }
 0x9f6   : > { %3014 = vrot.lane.b32.xlu1 %v6129_v9, %s6477_s1 }
 0x9f8   : > { %v5027_v37 = vld [vmem:[%s6481_s5] ss:$0 sm:$0xff]  ;;  %s6484_s5 = smov 120  }
 0x9fa   : > { %2862 = vrot.lane.b32.xlu0 %v6123_v8, %s6477_s1 }
 0xa01   : > { %v2768_v53 = vpop.xlane.xlu1 %2767 }
 0xa02   : > { %5587 = vrcp.f32 %v2768_v53 }
 0xa0f   : > { %v5588_v56 = vpop.eup %5587 }
 0xa10   : > { %v2782_v58 = vmul.f32 %v5588_v56, %v5580_v35  ;;  %v5026_v35 = vld [vmem:[%s6480_s3] ss:$0 sm:$0xff]  ;;  %s6483_s3 = sld [smem:[#allocation20_spill]] }
 0xa12   : > { %5327 = vmatmul.mubr.msk.f32.vlgmr.msra.gmra.mxu0 %vm1150_vm2, %v2782_v58 }
 0xa13   : > { %5336 = vmatprep.mubr.msk.f32.mxu0 %vm5718_vm0, %v5717_v1 }
 0xa16   : > { %v5049_v58 = vld [vmem:[%s6483_s3] ss:$0 sm:$0xff]  ;;  %s6486_s3 = sld [smem:[#allocation17_spill]] }
 0xa19   : > { %2314 = vadd.xlane.f32.xlu0 %v2313_v60 }
 0xa69   : > { %v2771_v61 = vpop.xlane.xlu0 %2770 }
 0xa6a   : > { %v2774_v62 = vpop.xlane.xlu1 %2773  ;;  %5589 = vrcp.f32 %v2771_v61 }
 0xa6b   : > { %5591 = vrcp.f32 %v2774_v62 }
 0xa6d   : > { %v2777_v63 = vpop.xlane.xlu0 %2776 }
 0xa6e   : > { %v2939_v0 = vpop.permute.xlu1 %2938  ;;  %5593 = vrcp.f32 %v2777_v63 }
 0xa6f   : > { %5335 = vmatpush3.msra.mxu0 %v2939_v0 }
 0xa70   : > { %5344 = vmatprep.subr.mxu0 %v5717_v1 }
 0xa71   : > { %v2863_v2 = vpop.permute.xlu0 %2862 }
 0xa72   : > { %5330 = vmatpush3.msra.mxu1 %v2863_v2  ;;  %v3015_v8 = vpop.permute.xlu1 %3014 }
 0xa73   : > { %5339 = vmatprep.subr.mxu1 %v5717_v1 }
 0xa77   : > { %v5590_v3 = vpop.eup %5589 }
 0xa78   : > { %v5592_v50 = vpop.eup %5591  ;;  %v2783_v4 = vmul.f32 %v5590_v3, %v5582_v46 }
 0xa79   : > { %v2784_v6 = vmul.f32 %v5592_v50, %v5584_v47 }
 0xa7a   : > { %5332 = vmatmul.mubr.msk.f32.vlgmr.msra.gmra.mxu1 %vm1150_vm2, %v2783_v4 }
 0xa7b   : > { %v5594_v9 = vpop.eup %5593  ;;  %5337 = vmatmul.mubr.msk.f32.vlgmr.msra.gmra.mxu0 %vm1150_vm2, %v2784_v6  ;;  %5340 = vmatpush3.msra.mxu1 %v3015_v8 }
 0xa7c   : > { %5341 = vmatprep.mubr.msk.f32.mxu1 %vm5718_vm0, %v5717_v1  ;;  %v2785_v10 = vmul.f32 %v5594_v9, %v5586_v51  ;;  %5345 = vmatpush3.msra.mxu0 %v3090_v7  ;;  %v5047_v9 = vld [vmem:[%s6486_s3] ss:$0 sm:$0xff]  ;;  %s6494_s3 = sld [smem:[#allocation26_spill]] }
 0xa7d   : > { %5346 = vmatprep.mubr.msk.f32.mxu0 %vm5718_vm0, %v5717_v1  ;;  %5349 = vmatprep.subr.mxu1 %v5717_v1 }
 0xa7e   : > { %5342 = vmatmul.mubr.msk.f32.vlgmr.msra.gmra.mxu1 %vm1150_vm2, %v2785_v10  ;;  %5354 = vmatprep.subr.mxu0 %v5717_v1 }
 0xa7f   : > { %5351 = vmatprep.mubr.msk.f32.mxu1 %vm5718_vm0, %v5717_v1  ;;  %5350 = vmatpush3.msra.mxu1 %v3091_v16 }
 0xa80   : > { %5359 = vmatprep.subr.mxu1 %v5717_v1 }
 0xaa2   : > { %v2315_v11 = vpop.xlane.xlu0 %2314 }
 0xaa3   : > { %v2316_v12 = vmul.f32 0.03125, %v2315_v11  ;;  %v5048_v11 = vld [vmem:[%s6487_s9] ss:$0 sm:$0xff]  ;;  %s6488_s9 = sld [smem:[#allocation21_spill]] }
 0xaa5   : > { %v2317_v13 = vsub.f32 %v2312_v59, %v2316_v12 }
 0xaa7   : > { %v2318_v14 = vmul.f32 %v2317_v13, %v2317_v13 }
 0xaa9   : > { %v2319_v15 = vsel %vm1067_vm1, %v2318_v14, 0.0 }
 0xaaa   : > { %2320 = vadd.xlane.f32.xlu0 %v2319_v15 }
 0xad2   : > { %v2858_v18 = vpop.f32.mrf.mxu0 }
 0xad3   : > { %5347 = vmatmul.mubr.msk.f32.vlgmr.msra.gmra.mxu0 %vm1150_vm2, %v2858_v18 }
 0xad4   : > { %v5328_v19 = vpop.f32.mrf.mxu0  ;;  %5355 = vmatpush3.msra.mxu0 %v3092_v17  ;;  %5356 = vmatprep.mubr.msk.f32.mxu0 %vm5718_vm0, %v5717_v1 }
 0xad5   : > { %5364 = vmatprep.subr.mxu0 %v5717_v1 }
 0xb33   : > { %v2321_v20 = vpop.xlane.xlu0 %2320 }
 0xb34   : > { %v2322_v21 = vmul.f32 0.03125, %v2321_v20 }
 0xb36   : > { %v2323_v22 = vadd.f32 1e-05, %v2322_v21 }
 0xb38   : > { %5595 = vrsqrt.f32 %v2323_v22 }
 0xb3a   : > { %v2934_v24 = vpop.f32.mrf.mxu1 }
 0xb3b   : > { %v3010_v25 = vpop.f32.mrf.mxu0  ;;  %5352 = vmatmul.mubr.msk.f32.vlgmr.msra.gmra.mxu1 %vm1150_vm2, %v2934_v24 }
 0xb3c   : > { %5357 = vmatmul.mubr.msk.f32.vlgmr.msra.gmra.mxu0 %vm1150_vm2, %v3010_v25  ;;  %v5333_v26 = vpop.f32.mrf.mxu1  ;;  %5360 = vmatpush3.msra.mxu1 %v3093_v23 }
 0xb3d   : > { %v5338_v27 = vpop.f32.mrf.mxu0  ;;  %5361 = vmatprep.mubr.msk.f32.mxu1 %vm5718_vm0, %v5717_v1  ;;  %5375 = vmatprep.subr.mxu1 %v5717_v1 }
 0xb3e   : > { %v3086_v29 = vpop.f32.mrf.mxu1  ;;  %5365 = vmatpush3.msra.mxu0 %v3430_v28  ;;  %5372 = vmatprep.mubr.msk.f32.mxu0 %vm5718_vm0, %v5717_v1 }
 0xb3f   : > { %5362 = vmatmul.mubr.msk.f32.vlgmr.msra.gmra.mxu1 %vm1150_vm2, %v3086_v29  ;;  %5366 = vmatprep.subr.mxu0 %v5717_v1 }
 0xb40   : > { %v5343_v31 = vpop.f32.mrf.mxu1  ;;  %5376 = vmatpush3.msra.mxu1 %v3430_v28  ;;  %5383 = vmatprep.mubr.msk.f32.mxu1 %vm5718_vm0, %v5717_v1 }
 0xb41   : > { %5377 = vmatprep.subr.mxu1 %v5717_v1  ;;  %5367 = vmatpush3.msra.mxu0 %v3429_v30 }
 0xb42   : > { %5378 = vmatpush3.msra.mxu1 %v3429_v30  ;;  %5368 = vmatprep.subr.mxu0 %v5717_v1 }
 0xb43   : > { %5379 = vmatprep.subr.mxu1 %v5717_v1  ;;  %5369 = vmatpush3.msra.mxu0 %v3428_v32 }
 0xb44   : > { %5380 = vmatpush3.msra.mxu1 %v3428_v32  ;;  %5370 = vmatprep.subr.mxu0 %v5717_v1 }
 0xb45   : > { %v5596_v34 = vpop.eup %5595  ;;  %5381 = vmatprep.subr.mxu1 %v5717_v1  ;;  %5371 = vmatpush3.msra.mxu0 %v3427_v33 }
 0xb46   : > { %v2325_v36 = vmul.f32 %v5596_v34, %v2317_v13  ;;  %5382 = vmatpush3.msra.mxu1 %v3427_v33  ;;  %5386 = vmatprep.subr.mxu0 %v5717_v1 }
 0xb47   : > { %5391 = vmatprep.subr.mxu1 %v5717_v1 }
 0xb48   : > { %v2333_v38 = vmul.f32 %v5026_v35, %v2325_v36 }
 0xb4a   : > { %v2341_v39 = vadd.f32 %v5027_v37, %v2333_v38 }
 0xb4c   : > { %5384 = vmatmul.mubr.msk.f32.vlgmr.msra.gmra.mxu1 %vm1067_vm1, %v2341_v39 }
 0xb4d   : > { %5393 = vmatprep.mubr.msk.f32.mxu1 %vm5718_vm0, %v5717_v1 }
 0xb93   : > { %v3163_v40 = vpop.f32.mrf.mxu0 }
 0xb95   : > { %v5348_v5 = vpop.f32.mrf.mxu0 }
 0xbfb   : > { %v3236_v41 = vpop.f32.mrf.mxu1 }
 0xbfc   : > { %v3386_v42 = vadd.f32 %v3236_v41, %v3163_v40  ;;  %v3309_v43 = vpop.f32.mrf.mxu0 }
 0xbfd   : > { %v5353_v44 = vpop.f32.mrf.mxu1 }
 0xbfe   : > { %v3387_v45 = vadd.f32 %v3386_v42, %v3309_v43  ;;  %v5358_v46 = vpop.f32.mrf.mxu0 }
 0xbff   : > { %v3382_v47 = vpop.f32.mrf.mxu1 }
 0xc00   : > { %v3388_v49 = vadd.f32 %v3387_v45, %v3382_v47 }
 0xc01   : > { %v5363_v51 = vpop.f32.mrf.mxu1 }
 0xc02   : > { %v3396_v52 = vadd.f32 %v5046_v48, %v3388_v49 }
 0xc04   : > { %v3397_v53 = vadd.f32 %v3396_v52, %v6096_v55 }
 0xc06   : > { %v3398_v54 = vsel %vm1067_vm1, %v3397_v53, 0.0 }
 0xc07   : > { %3399 = vadd.xlane.f32.xlu1 %v3398_v54 }
 0xc0c   : > { %v3580_v56 = vpop.f32.mrf.mxu1 }
 0xc0d   : > { %v6235_v59 = vadd.f32 %v5049_v58, %v3580_v56 }
 0xc0e   : > { %v5385_v57 = vpop.f32.mrf.mxu1 }
 0xc18   : > { %3592 = vrot.lane.b32.xlu1 %v6235_v59, %s6484_s5 }
 0xc1c   : > { %3596 = vrot.lane.b32.xlu1 %v6235_v59, %s6475_s11 }
 0xc20   : > { %3598 = vrot.lane.b32.xlu1 %v6235_v59, %s6476_s23 }
 0xc90   : > { %v3400_v60 = vpop.xlane.xlu1 %3399 }
 0xc91   : > { %v3401_v61 = vmul.f32 0.03125, %v3400_v60 }
 0xc93   : > { %v3402_v55 = vsub.f32 %v3397_v53, %v3401_v61 }
 0xc94   : > { %v6246_v0 = vpop.permute.xlu1 %3592 }
 0xc95   : > { %v3403_v62 = vmul.f32 %v3402_v55, %v3402_v55 }
 0xc97   : > { %v3404_v63 = vsel %vm1067_vm1, %v3403_v62, 0.0 }
 0xc98   : > { %3405 = vadd.xlane.f32.xlu0 %v3404_v63  ;;  %v6254_v6 = vpop.permute.xlu1 %3596 }
 0xc9c   : > { %v3599_v14 = vpop.permute.xlu1 %3598 }
 0xcae   : > { %3594 = vrot.lane.b32.xlu0 %v6235_v59, %s6485_s8 }
 0xcb2   : > { %3674 = vrot.lane.b32.xlu0 %v6246_v0, %s6476_s23 }
 0xd21   : > { %v3406_v2 = vpop.xlane.xlu0 %3405 }
 0xd22   : > { %v3407_v3 = vmul.f32 0.03125, %v3406_v2 }
 0xd24   : > { %v3408_v50 = vadd.f32 1e-05, %v3407_v3 }
 0xd25   : > { %v6250_v4 = vpop.permute.xlu0 %3594 }
 0xd26   : > { %5597 = vrsqrt.f32 %v3408_v50  ;;  %3750 = vrot.lane.b32.xlu1 %v6250_v4, %s6476_s23 }
 0xd29   : > { %v3675_v7 = vpop.permute.xlu0 %3674 }
 0xd2a   : > { %5392 = vmatpush3.xpose.msk.msra.mxu1 %vm1150_vm2, %v3675_v7  ;;  %3826 = vrot.lane.b32.xlu1 %v6254_v6, %s6476_s23  ;;  %s6490_s23 = sld [smem:[#allocation25_spill]] }
 0xd2b   : > { %5401 = vmatprep.subr.mxu1 %v5717_v1 }
 0xd33   : > { %v5598_v8 = vpop.eup %5597 }
 0xd34   : > { %v3410_v10 = vmul.f32 %v5598_v8, %v3402_v55 }
 0xd36   : > { %v3418_v12 = vmul.f32 %v5047_v9, %v3410_v10  ;;  %v4254_v10 = vld [vmem:[%s6488_s9] sm:$0xff] }
 0xd38   : > { %v6262_v13 = vadd.f32 %v5048_v11, %v3418_v12 }
 0xd3a   : > { %5373 = vmatmul.mubr.msk.f32.vlgmr.msra.gmra.mxu0 %vm1067_vm1, %v6262_v13 }
 0xd3b   : > { %5387 = vmatpush3.xpose.msk.msra.mxu0 %vm1150_vm2, %v3599_v14  ;;  %5388 = vmatprep.mubr.msk.f32.mxu0 %vm5718_vm0, %v5717_v1  ;;  %v4255_v14 = vld [vmem:[%s6488_s9 + $0x8] sm:$0xff] }
 0xd3c   : > { %5396 = vmatprep.subr.mxu0 %v5717_v1 }
 0xd98   : > { %v3751_v18 = vpop.permute.xlu1 %3750 }
 0xd9c   : > { %v3827_v19 = vpop.permute.xlu1 %3826 }
 0xdfa   : > { %v3507_v15 = vpop.f32.mrf.mxu0 }
 0xdfb   : > { %v3508_v16 = vadd.f32 %v5049_v58, %v3507_v15  ;;  %v4256_v15 = vld [vmem:[%s6488_s9 + $0x10] sm:$0xff] }
 0xdfc   : > { %v5374_v17 = vpop.f32.mrf.mxu0 }
 0xdfd   : > { %3589 = vrot.lane.b32.xlu1 %v3508_v16, %s6475_s11  ;;  %3585 = vrot.lane.b32.xlu0 %v3508_v16, %s6484_s5  ;;  %s6489_s11 = sld [smem:[#allocation22_spill]] }
 0xdfe   : > { %5389 = vmatmul.mubr.msk.f32.vlgmr.msra.gmra.mxu0 %vm1150_vm2, %v3508_v16  ;;  %s6492_s5 = sld [smem:[#allocation24_spill]] }
 0xdff   : > { %5397 = vmatpush3.xpose.msk.msra.mxu0 %vm1150_vm2, %v3751_v18  ;;  %5398 = vmatprep.mubr.msk.f32.mxu0 %vm5718_vm0, %v5717_v1  ;;  %v4257_v18 = vld [vmem:[%s6488_s9 + $0x18] sm:$0xff] }
 0xe00   : > { %5406 = vmatprep.subr.mxu0 %v5717_v1 }
 0xe01   : > { %3587 = vrot.lane.b32.xlu0 %v3508_v16, %s6485_s8  ;;  %s6493_s8 = sld [smem:[#allocation27_spill]] }
 0xe6f   : > { %v3586_v20 = vpop.permute.xlu0 %3585  ;;  %v3590_v21 = vpop.permute.xlu1 %3589 }
 0xe70   : > { %5394 = vmatmul.mubr.msk.f32.vlgmr.msra.gmra.mxu1 %vm1150_vm2, %v3586_v20 }
 0xe71   : > { %5402 = vmatpush3.xpose.msk.msra.mxu1 %vm1150_vm2, %v3827_v19  ;;  %5403 = vmatprep.mubr.msk.f32.mxu1 %vm5718_vm0, %v5717_v1 }
 0xe72   : > { %5411 = vmatprep.subr.mxu1 %v5717_v1 }
 0xe73   : > { %v3588_v22 = vpop.permute.xlu0 %3587 }
 0xe74   : > { %5399 = vmatmul.mubr.msk.f32.vlgmr.msra.gmra.mxu0 %vm1150_vm2, %v3588_v22  ;;  %5404 = vmatmul.mubr.msk.f32.vlgmr.msra.gmra.mxu1 %vm1150_vm2, %v3590_v21 }
 0xe75   : > { %5408 = vmatprep.mubr.msk.f32.mxu0 %vm5718_vm0, %v5717_v1  ;;  %5413 = vmatprep.mubr.msk.f32.mxu1 %vm5718_vm0, %v5717_v1 }
 0xebe   : > { %v3670_v23 = vpop.f32.mrf.mxu0 }
 0xebf   : > { %v3902_v24 = vmul.f32 0.35355338, %v3670_v23 }
 0xec0   : > { %v5390_v25 = vpop.f32.mrf.mxu0 }
 0xec1   : > { %v3906_v26 = vsel %vm1150_vm2, %v3902_v24, -inf }
 0xec2   : > { %3907 = vmax.xlane.f32.xlu0 %v3906_v26 }
 0xf30   : > { %v3746_v27 = vpop.f32.mrf.mxu1 }
 0xf31   : > { %v3903_v28 = vmul.f32 0.35355338, %v3746_v27 }
 0xf32   : > { %v5395_v29 = vpop.f32.mrf.mxu1 }
 0xf33   : > { %v3909_v30 = vsel %vm1150_vm2, %v3903_v28, -inf }
 0xf34   : > { %3910 = vmax.xlane.f32.xlu1 %v3909_v30  ;;  %v3822_v31 = vpop.f32.mrf.mxu0  ;;  %v3898_v32 = vpop.f32.mrf.mxu1 }
 0xf35   : > { %v3904_v33 = vmul.f32 0.35355338, %v3822_v31  ;;  %v3905_v36 = vmul.f32 0.35355338, %v3898_v32 }
 0xf36   : > { %v5400_v34 = vpop.f32.mrf.mxu0  ;;  %v5405_v35 = vpop.f32.mrf.mxu1 }
 0xf37   : > { %v3912_v37 = vsel %vm1150_vm2, %v3904_v33, -inf  ;;  %v3915_v38 = vsel %vm1150_vm2, %v3905_v36, -inf  ;;  %v5068_v34 = vld [vmem:[%s6489_s11] ss:$0 sm:$0xff]  ;;  %s6495_s11 = sld [smem:[#allocation28_spill]] }
 0xf38   : > { %3913 = vmax.xlane.f32.xlu0 %v3912_v37 }
 0xf3c   : > { %3916 = vmax.xlane.f32.xlu0 %v3915_v38 }
 0xf45   : > { %3950 = vrot.lane.b32.xlu1 %v6235_v59, %s6477_s1 }
 0xf4b   : > { %v3908_v39 = vpop.xlane.xlu0 %3907 }
 0xf4c   : > { %v3918_v40 = vsub.f32 %v3902_v24, %v3908_v39 }
 0xf4e   : > { %v3922_v5 = vmul.f32 1.442695, %v3918_v40 }
 0xf50   : > { %5599 = vpow2.f32 %v3922_v5 }
 0xf5d   : > { %v5600_v41 = vpop.eup %5599 }
 0xf5e   : > { %v3930_v42 = vsel %vm1150_vm2, %v5600_v41, 0.0 }
 0xf69   : > { %3931 = vadd.xlane.f32.xlu1 %v3930_v42 }
 0xfbd   : > { %v3911_v43 = vpop.xlane.xlu1 %3910 }
 0xfbe   : > { %v3919_v44 = vsub.f32 %v3903_v28, %v3911_v43 }
 0xfc0   : > { %v3924_v45 = vmul.f32 1.442695, %v3919_v44  ;;  %v4594_v44 = vld [vmem:[%s6490_s23 + $0x18] sm:$0xff] }
 0xfc1   : > { %v3951_v46 = vpop.permute.xlu1 %3950  ;;  %v3914_v47 = vpop.xlane.xlu0 %3913 }
 0xfc2   : > { %5601 = vpow2.f32 %v3924_v45  ;;  %v3920_v48 = vsub.f32 %v3904_v33, %v3914_v47  ;;  %5407 = vmatpush3.msra.mxu0 %v3951_v46  ;;  %v4593_v45 = vld [vmem:[%s6490_s23 + $0x10] sm:$0xff]  ;;  %v4592_v46 = vld [vmem:[%s6490_s23 + $0x8] sm:$0xff] }
 0xfc3   : > { %5416 = vmatprep.subr.mxu0 %v5717_v1 }
 0xfc4   : > { %v3926_v49 = vmul.f32 1.442695, %v3920_v48 }
 0xfc5   : > { %v3917_v51 = vpop.xlane.xlu0 %3916 }
 0xfc6   : > { %5603 = vpow2.f32 %v3926_v49  ;;  %v3921_v52 = vsub.f32 %v3905_v36, %v3917_v51 }
 0xfc8   : > { %v3928_v53 = vmul.f32 1.442695, %v3921_v52 }
 0xfca   : > { %5605 = vpow2.f32 %v3928_v53 }
 0xfcf   : > { %v5602_v54 = vpop.eup %5601 }
 0xfd0   : > { %v3933_v56 = vsel %vm1150_vm2, %v5602_v54, 0.0 }
 0xfd1   : > { %3934 = vadd.xlane.f32.xlu0 %v3933_v56 }
 0xfd3   : > { %v5604_v57 = vpop.eup %5603 }
 0xfd4   : > { %v3936_v58 = vsel %vm1150_vm2, %v5604_v57, 0.0 }
 0xfd5   : > { %3937 = vadd.xlane.f32.xlu1 %v3936_v58  ;;  %v4679_v58 = vld [vmem:[%s6493_s8 + $0x18] sm:$0xff] }
 0xfd7   : > { %v5606_v59 = vpop.eup %5605 }
 0xfd8   : > { %v3939_v60 = vsel %vm1150_vm2, %v5606_v59, 0.0 }
 0xfd9   : > { %3940 = vadd.xlane.f32.xlu0 %v3939_v60  ;;  %v4677_v60 = vld [vmem:[%s6493_s8 + $0x8] sm:$0xff] }
 0xfe6   : > { %4102 = vrot.lane.b32.xlu1 %v6250_v4, %s6477_s1 }
 0xfea   : > { %4178 = vrot.lane.b32.xlu1 %v6254_v6, %s6477_s1 }
 0xfef   : > { %4026 = vrot.lane.b32.xlu0 %v6246_v0, %s6477_s1  ;;  %s6491_s1 = sld [smem:[#allocation23_spill]] }
 0xff2   : > { %v3932_v61 = vpop.xlane.xlu1 %3931 }
 0xff3   : > { %5607 = vrcp.f32 %v3932_v61  ;;  %v4676_v61 = vld [vmem:[%s6493_s8] sm:$0xff] }
 0xff5   : > { %v5069_v52 = vld [vmem:[%s6491_s1] ss:$0 sm:$0xff]  ;;  %s6496_s1 = sld [smem:[#allocation29_spill]] }
0x1000   : > { %v5608_v55 = vpop.eup %5607 }
0x1001   : > { %v3946_v62 = vmul.f32 %v5608_v55, %v5600_v41  ;;  %v5071_v55 = vld [vmem:[%s6494_s3] ss:$0 sm:$0xff] }
0x1003   : > { %5409 = vmatmul.mubr.msk.f32.vlgmr.msra.gmra.mxu0 %vm1150_vm2, %v3946_v62 }
0x1004   : > { %5418 = vmatprep.mubr.msk.f32.mxu0 %vm5718_vm0, %v5717_v1 }
0x105a   : > { %v3935_v63 = vpop.xlane.xlu0 %3934 }
0x105b   : > { %5609 = vrcp.f32 %v3935_v63 }
0x105e   : > { %v3938_v2 = vpop.xlane.xlu1 %3937 }
0x105f   : > { %5611 = vrcp.f32 %v3938_v2 }
0x1062   : > { %v4103_v3 = vpop.permute.xlu1 %4102  ;;  %v3941_v50 = vpop.xlane.xlu0 %3940 }
0x1063   : > { %5613 = vrcp.f32 %v3941_v50  ;;  %5417 = vmatpush3.msra.mxu0 %v4103_v3  ;;  %v5073_v50 = vld [vmem:[%s6495_s11] ss:$0 sm:$0xff]  ;;  %s5080_s11 = sshll.u32 %s5926_s0, 7 }
0x1064   : > { %5426 = vmatprep.subr.mxu0 %v5717_v1  ;;  %s6384_s12 = scalar_lea.hbm %s5903_s6, %s5080_s11 }
0x1066   : > { %v4027_v0 = vpop.permute.xlu0 %4026  ;;  %v4179_v7 = vpop.permute.xlu1 %4178 }
0x1067   : > { %5412 = vmatpush3.msra.mxu1 %v4027_v0 }
0x1068   : > { %v5610_v4 = vpop.eup %5609  ;;  %5421 = vmatprep.subr.mxu1 %v5717_v1 }
0x1069   : > { %v3947_v6 = vmul.f32 %v5610_v4, %v5602_v54  ;;  %v5070_v54 = vld [vmem:[%s6492_s5] ss:$0 sm:$0xff]  ;;  %s1044_s5 = sand.u32 1, %s5673_s16  }
0x106a   : > { %s4998_s3 = sshll.u32 %s1044_s5, 3 }
0x106b   : > { %5414 = vmatmul.mubr.msk.f32.vlgmr.msra.gmra.mxu1 %vm1150_vm2, %v3947_v6 }
0x106c   : > { %v5612_v8 = vpop.eup %5611  ;;  %5422 = vmatpush3.msra.mxu1 %v4179_v7  ;;  %5423 = vmatprep.mubr.msk.f32.mxu1 %vm5718_vm0, %v5717_v1 }
0x106d   : > { %v3948_v9 = vmul.f32 %v5612_v8, %v5604_v57  ;;  %5431 = vmatprep.subr.mxu1 %v5717_v1 }
0x106f   : > { %5419 = vmatmul.mubr.msk.f32.vlgmr.msra.gmra.mxu0 %vm1150_vm2, %v3948_v9 }
0x1070   : > { %v5614_v11 = vpop.eup %5613  ;;  %5427 = vmatpush3.msra.mxu0 %v4254_v10  ;;  %5428 = vmatprep.mubr.msk.f32.mxu0 %vm5718_vm0, %v5717_v1 }
0x1071   : > { %v3949_v12 = vmul.f32 %v5614_v11, %v5606_v59  ;;  %5436 = vmatprep.subr.mxu0 %v5717_v1  ;;  %v4678_v59 = vld [vmem:[%s6493_s8 + $0x10] sm:$0xff]  ;;  %s1046_s8 = scalar_lea.vmem [#allocation2], %s4998_s3 }
0x1072   : > { %s4889_s9 = sshll.u32 %s1046_s8, 4  ;;  %s4890_s9 = int_to_ptr.vmem [resolvable:$true] %s4889_s9 }
0x1073   : > { %5424 = vmatmul.mubr.msk.f32.vlgmr.msra.gmra.mxu1 %vm1150_vm2, %v3949_v12  ;;  %s5621_s13 = scalar_lea.vmem %s4890_s9, 128  ;;  %p5628_p0 = scmp.lt.s32.totalorder %s4890_s9, %s5626_s17 }
0x1074   : > { %5433 = vmatprep.mubr.msk.f32.mxu1 %vm5718_vm0, %v5717_v1  ;;  %5432 = vmatpush3.msra.mxu1 %v4255_v14  ;;  %p5622_p11 = scmp.ne.s32.totalorder %s4890_s9, %s5621_s13 }
0x1075   : > { %5441 = vmatprep.subr.mxu1 %v5717_v1 }
0x1076   : > { %p5623_p12 = pnand %p5622_p11, %p5943_p5 }
0x1078   : > { %p5624_p13 = pneg %p5623_p12 }
0x10c3   : > { %v4022_v16 = vpop.f32.mrf.mxu0 }
0x10c4   : > { %5429 = vmatmul.mubr.msk.f32.vlgmr.msra.gmra.mxu0 %vm1150_vm2, %v4022_v16  ;;  %v4792_v16 = vld [vmem:[%s5893_s27 + $0x10] sm:$0xff] }
0x10c5   : > { %v5410_v17 = vpop.f32.mrf.mxu0  ;;  %5437 = vmatpush3.msra.mxu0 %v4256_v15  ;;  %5438 = vmatprep.mubr.msk.f32.mxu0 %vm5718_vm0, %v5717_v1  ;;  %v4793_v15 = vld [vmem:[%s5893_s27 + $0x18] sm:$0xff] }
0x10c6   : > { %5446 = vmatprep.subr.mxu0 %v5717_v1  ;;  %v4791_v17 = vld [vmem:[%s5893_s27 + $0x8] sm:$0xff] }
0x112b   : > { %v4098_v19 = vpop.f32.mrf.mxu1 }
0x112c   : > { %5434 = vmatmul.mubr.msk.f32.vlgmr.msra.gmra.mxu1 %vm1150_vm2, %v4098_v19 }
0x112d   : > { %v5415_v20 = vpop.f32.mrf.mxu1  ;;  %5442 = vmatpush3.msra.mxu1 %v4257_v18  ;;  %5443 = vmatprep.mubr.msk.f32.mxu1 %vm5718_vm0, %v5717_v1  ;;  %v4790_v18 = vld [vmem:[%s5893_s27] sm:$0xff] }
0x112e   : > { %5457 = vmatprep.subr.mxu1 %v5717_v1 }
0x112f   : > { %v4174_v21 = vpop.f32.mrf.mxu0 }
0x1130   : > { %5439 = vmatmul.mubr.msk.f32.vlgmr.msra.gmra.mxu0 %vm1150_vm2, %v4174_v21 }
0x1131   : > { %v5420_v22 = vpop.f32.mrf.mxu0  ;;  %5454 = vmatprep.mubr.msk.f32.mxu0 %vm5718_vm0, %v5717_v1  ;;  %5447 = vmatpush3.msra.mxu0 %v4594_v44 }
0x1132   : > { %5448 = vmatprep.subr.mxu0 %v5717_v1 }
0x1133   : > { %v4250_v23 = vpop.f32.mrf.mxu1  ;;  %5449 = vmatpush3.msra.mxu0 %v4593_v45 }
0x1134   : > { %5444 = vmatmul.mubr.msk.f32.vlgmr.msra.gmra.mxu1 %vm1150_vm2, %v4250_v23  ;;  %5450 = vmatprep.subr.mxu0 %v5717_v1  ;;  %v5075_v23 = vld [vmem:[%s6496_s1] ss:$0 sm:$0xff]  ;;  %s4876_s1 = scalar_lea.sflag [#allocation3], %s1044_s5 }
0x1135   : > { %v5425_v24 = vpop.f32.mrf.mxu1  ;;  %5465 = vmatprep.mubr.msk.f32.mxu1 %vm5718_vm0, %v5717_v1  ;;  %5451 = vmatpush3.msra.mxu0 %v4592_v46 }
0x1136   : > { %5452 = vmatprep.subr.mxu0 %v5717_v1  ;;  %5458 = vmatpush3.msra.mxu1 %v4679_v58 }
0x1137   : > { %5459 = vmatprep.subr.mxu1 %v5717_v1 }
0x1138   : > { %5460 = vmatpush3.msra.mxu1 %v4678_v59 }
0x1139   : > { %5461 = vmatprep.subr.mxu1 %v5717_v1 }
0x113a   : > { %5462 = vmatpush3.msra.mxu1 %v4677_v60 }
0x113b   : > { %5463 = vmatprep.subr.mxu1 %v5717_v1 }
0x113c   : > { %5464 = vmatpush3.msra.mxu1 %v4676_v61 }
0x1184   : > { %v4327_v25 = vpop.f32.mrf.mxu0 }
0x1186   : > { %v5430_v26 = vpop.f32.mrf.mxu0 }
0x11ec   : > { %v4400_v27 = vpop.f32.mrf.mxu1 }
0x11ed   : > { %v4550_v30 = vadd.f32 %v4400_v27, %v4327_v25  ;;  %v5076_v25 = vld [vmem:[%s5888_s30] ss:$0 sm:$0xff] }
0x11ee   : > { %v5435_v28 = vpop.f32.mrf.mxu1 }
0x11ef   : > { %v5077_v28 = vld [vmem:[%s6497_s4] ss:$0 sm:$0xff]  ;;  %s5627_s4 = scalar_lea.vmem %s5626_s17, 256 }
0x11f0   : > { %v4473_v29 = vpop.f32.mrf.mxu0  ;;  %p5629_p1 = scmp.lt.s32.totalorder %s5627_s4, %s5621_s13 }
0x11f1   : > { %v4551_v32 = vadd.f32 %v4550_v30, %v4473_v29 }
0x11f2   : > { %v5440_v31 = vpop.f32.mrf.mxu0  ;;  %p5630_p2 = por %p5629_p1, %p5628_p0 }
0x11f4   : > { %v4546_v33 = vpop.f32.mrf.mxu1  ;;  %p5631_p3 = pnand %p5630_p2, %p5624_p13 }
0x11f5   : > { %v4552_v35 = vadd.f32 %v4551_v32, %v4546_v33 }
0x11f6   : > { %v5445_v36 = vpop.f32.mrf.mxu1 }
0x11f7   : > { %v4560_v37 = vadd.f32 %v5068_v34, %v4552_v35 }
0x11f9   : > { %v4561_v38 = vadd.f32 %v4560_v37, %v6262_v13  ;;  %v4591_v13 = vld [vmem:[%s6490_s23] sm:$0xff] }
0x11fa   : > { %5453 = vmatpush3.msra.mxu0 %v4591_v13 }
0x11fb   : > { %v4562_v39 = vsel %vm1067_vm1, %v4561_v38, 0.0  ;;  %5468 = vmatprep.subr.mxu0 %v5717_v1 }
0x11fc   : > { %4563 = vadd.xlane.f32.xlu0 %v4562_v39 }
0x1285   : > { %v4564_v40 = vpop.xlane.xlu0 %4563 }
0x1286   : > { %v4565_v5 = vmul.f32 0.03125, %v4564_v40 }
0x1288   : > { %v4566_v41 = vsub.f32 %v4561_v38, %v4565_v5 }
0x128a   : > { %v4567_v42 = vmul.f32 %v4566_v41, %v4566_v41 }
0x128c   : > { %v4568_v43 = vsel %vm1067_vm1, %v4567_v42, 0.0 }
0x128d   : > { %4569 = vadd.xlane.f32.xlu1 %v4568_v43 }
0x1316   : > { %v4570_v47 = vpop.xlane.xlu1 %4569 }
0x1317   : > { %v4571_v48 = vmul.f32 0.03125, %v4570_v47 }
0x1319   : > { %v4572_v49 = vadd.f32 1e-05, %v4571_v48 }
0x131b   : > { %5615 = vrsqrt.f32 %v4572_v49 }
0x1328   : > { %v5616_v51 = vpop.eup %5615 }
0x1329   : > { %v4574_v53 = vmul.f32 %v5616_v51, %v4566_v41 }
0x132b   : > { %v4582_v56 = vmul.f32 %v5069_v52, %v4574_v53 }
0x132d   : > { %v4590_v57 = vadd.f32 %v5070_v54, %v4582_v56 }
0x132f   : > { %5455 = vmatmul.mubr.msk.f32.vlgmr.msra.gmra.mxu0 %vm1067_vm1, %v4590_v57 }
0x1330   : > { %5476 = vmatprep.mubr.msk.f32.mxu0 %vm5718_vm0, %v5717_v1  ;;  %5469 = vmatpush3.msra.mxu0 %v4793_v15 }
0x1331   : > { %5470 = vmatprep.subr.mxu0 %v5717_v1 }
0x1332   : > { %5471 = vmatpush3.msra.mxu0 %v4792_v16 }
0x1333   : > { %5472 = vmatprep.subr.mxu0 %v5717_v1 }
0x1334   : > { %5473 = vmatpush3.msra.mxu0 %v4791_v17 }
0x1335   : > { %5474 = vmatprep.subr.mxu0 %v5717_v1 }
0x1336   : > { %5475 = vmatpush3.msra.mxu0 %v4790_v18 }
0x13ef   : > { %v4671_v62 = vpop.f32.mrf.mxu0 }
0x13f0   : > { %v4672_v63 = vadd.f32 %v5071_v55, %v4671_v62 }
0x13f1   : > { %v5456_v2 = vpop.f32.mrf.mxu0 }
0x13f2   : > { %5617 = vtanh.f32 %v4672_v63 }
0x13ff   : > { %v5618_v3 = vpop.eup %5617 }
0x1400   : > { %5466 = vmatmul.mubr.msk.f32.vlgmr.msra.gmra.mxu1 %vm1067_vm1, %v5618_v3 }
0x14c0   : > { %v4756_v0 = vpop.f32.mrf.mxu1 }
0x14c1   : > { %v4757_v4 = vadd.f32 %v5073_v50, %v4756_v0 }
0x14c2   : > { %v5467_v6 = vpop.f32.mrf.mxu1 }
0x14c3   : > { %v4760_v7 = vadd.f32 %v4757_v4, %v4590_v57 }
0x14c5   : > { %v4761_v8 = vsel %vm1067_vm1, %v4760_v7, 0.0 }
0x14c6   : > { %4762 = vadd.xlane.f32.xlu0 %v4761_v8 }
0x154f   : > { %v4763_v9 = vpop.xlane.xlu0 %4762 }
0x1550   : > { %v4764_v10 = vmul.f32 0.03125, %v4763_v9 }
0x1552   : > { %v4765_v11 = vsub.f32 %v4760_v7, %v4764_v10 }
0x1554   : > { %v4766_v12 = vmul.f32 %v4765_v11, %v4765_v11 }
0x1556   : > { %v4767_v14 = vsel %vm1067_vm1, %v4766_v12, 0.0 }
0x1557   : > { %4768 = vadd.xlane.f32.xlu0 %v4767_v14 }
0x15e0   : > { %v4769_v19 = vpop.xlane.xlu0 %4768 }
0x15e1   : > { %v4770_v20 = vmul.f32 0.03125, %v4769_v19 }
0x15e3   : > { %v4771_v21 = vadd.f32 1e-05, %v4770_v20 }
0x15e5   : > { %5619 = vrsqrt.f32 %v4771_v21 }
0x15f2   : > { %v5620_v22 = vpop.eup %5619 }
0x15f3   : > { %v4773_v24 = vmul.f32 %v5620_v22, %v4765_v11 }
0x15f5   : > { %v4781_v26 = vmul.f32 %v5075_v23, %v4773_v24 }
0x15f7   : > { %v4789_v27 = vadd.f32 %v5076_v25, %v4781_v26 }
0x15f9   : > { %5477 = vmatmul.mubr.msk.f32.vlgmr.msra.gmra.mxu0 %vm1067_vm1, %v4789_v27 }
0x16b9   : > { %v4870_v1 = vpop.f32.mrf.mxu0 }
0x16ba   : > { %v4871_v29 = vadd.f32 %v5077_v28, %v4870_v1 }
0x16bb   : > { %v5478_v30 = vpop.f32.mrf.mxu0 }
0x16bc   : > { %4874 = vst [vmem:[%s1046_s8] sm:$0xff] %v4871_v29 }
0x16bd   : > { %5634 = shalt.err (!%p5631_p3)
}
0x16be   : > { %s5635_s0 = scalar_lea.hbm %s6384_s12, 128  ;;  %s5639_s8 = scalar_lea.hbm %s5903_s6, 256 }
0x16bf   : > { %p5636_p4 = scmp.ne.s32.totalorder %s6384_s12, %s5635_s0  ;;  %p5640_p9 = scmp.lt.s32.totalorder %s6384_s12, %s5903_s6 }
0x16c0   : > { %p5641_p10 = scmp.lt.s32.totalorder %s5639_s8, %s5635_s0 }
0x16c1   : > { %p5637_p7 = pnand %p5636_p4, %p5943_p5 }
0x16c2   : > { %p5642_p11 = por %p5641_p10, %p5640_p9 }
0x16c3   : > { %p5638_p8 = pneg %p5637_p7 }
0x16c5   : > { %p5643_p12 = pnand %p5642_p11, %p5638_p8 }
0x16c7   : > { %5646 = shalt.err (!%p5643_p12)
}
0x16c8   : > { %5479 = dma.vmem_to_hbm [thread:$0]  (%p5943_p5), %s4890_s9, 128, %s6384_s12, %s4876_s1  }
0x16c9 PF: > { %p5485_p13 = scmp.ge.s32.totalorder %s5681_s22, 2  ;;  %s4901_s13 = sand.u32 1, %s5669_s15  }
0x16ca   : > { %s4902_s17 = scalar_lea.sflag [#allocation3], %s4901_s13 }
0x16cb   : > { %p5482_p0 = pnand %p5485_p13, %p5947_p6 }
0x16cd   : > { %p5483_p1 = pneg %p5482_p0 }
0x16cf   : > { %5664 = dma.done.wait (%p5483_p1), %s4902_s17, 128  }
0x16d0   : > { %5666 = vsyncadd (%p5483_p1), %s4902_s17, 4294967168  ;;  %p79_p2 = scmp.ge.s32.totalorder %s5930_s26, 4   ;;  %s6498_s15 = smov %s5673_s16 }
0x16d1   : > { %s6499_s16 = smov %s5677_s18  ;;  %s6500_s18 = smov %s5941_s2 }
0x16d2   : > { %s6501_s22 = smov %s5930_s26  ;;  %81 = sbr.rel (!%p79_p2) target bundleno = 68 (0x44), region = 228 }
0x16d7   :  { %4907 = vsyncpa [#allocation3], 1 }
0x16d8   :  { %4909 = vsyncpa [#allocation3 + $0x1], 1 }

</bundles_post_ra>
